<compile_context>
chip_gen: v7x
topology: tpu7x:2x2x1
jax: 0.10.0
libtpu: 0.0.40
codegen_flags: <defaults>
</compile_context>

<pallas_src>
import functools

import jax
import jax.numpy as jnp
from jax.experimental import pallas as pl
from jax.experimental.pallas import tpu as pltpu


def _round_up(x, m):
    return -(-x // m) * m


def _tpu_generation():
    """Best-effort TPU generation (4/5/6/7) from device_kind; advisory only."""
    try:
        kind = jax.devices()[0].device_kind.lower()
    except Exception:
        return 5
    for gen in (7, 6, 5, 4):
        if f"v{gen}" in kind:
            return gen
    return 5


def _default_tiles(gen, dtype):
    if gen >= 7:
        # Keep double-buffered in+out under ~20 MiB for the 64 MiB VMEM part.
        return (1024, 2048) if dtype == jnp.bfloat16 else (512, 2048)
    if gen == 6:
        # 128 MiB VMEM: bigger tiles push to ~86% of HBM roofline.
        return (1024, 2048)
    # v5e / unknown: per-step overhead already small at (512, 1024).
    return (512, 1024)


def _lora_kernel(w_ref, b_ref, a_ref, o_ref, *, scale, rank, tm,
                 b_resident, native_add):
    """out_tile = w_tile + sum_r (scale * B[:, r]) outer A[r, :]  (all VPU)."""
    if b_resident:
        # Whole (row-padded) lora_B lives in VMEM; slice this tile's rows.
        row0 = pl.program_id(0) * tm
        if tm % 8 == 0:
            row0 = pl.multiple_of(row0, 8)
        b = b_ref[pl.ds(row0, tm), :].astype(jnp.float32)     # (tm, rank)
    else:
        b = b_ref[...].astype(jnp.float32)                     # (tm, rank)
    a = a_ref[...].astype(jnp.float32)                         # (rank, tn)

    # rank is tiny (3) and static: unrolled VPU outer-product accumulation.
    # Scaling the (tm, 1) column is cheaper than scaling the (tm, tn) delta.
    delta = (b[:, 0:1] * scale) * a[0:1, :]
    for r in range(1, rank):
        delta = delta + (b[:, r:r + 1] * scale) * a[r:r + 1, :]

    if native_add:
        # bf16-native tile add (v6e/v7x): no full-tile up/down casts, half the
        # vreg and vld/vst traffic on the streaming path.
        o_ref[...] = w_ref[...] + delta.astype(o_ref.dtype)
    else:
        o_ref[...] = (w_ref[...].astype(jnp.float32) + delta).astype(o_ref.dtype)


def lora_forward(original_weights, lora_A, lora_B, scale, *,
                 tm=None, tn=None, w_buffers=2, donate_original=False):
    """out = original_weights + (lora_B @ lora_A) * scale  (Pallas TPU kernel)."""
    features_out, features_in = original_weights.shape
    rank, fin_a = lora_A.shape
    fout_b, rank_b = lora_B.shape
    assert fin_a == features_in and fout_b == features_out and rank_b == rank

    dtype = original_weights.dtype
    gen = _tpu_generation()
    tm_def, tn_def = _default_tiles(gen, dtype)
    tm = tm_def if tm is None else tm
    tn = tn_def if tn is None else tn

    # Full-dimension block when it fits in one tile, otherwise (8,128)-aligned
    # tiles with a cdiv grid (Pallas pads ragged reads, masks ragged writes).
    tm = features_out if features_out <= tm else tm
    tn = features_in if features_in <= tn else tn

    # v7x has 2 TensorCores: ensure grid axis 0 has >= 2 row blocks to shard.
    if gen >= 7 and features_out >= 16 and pl.cdiv(features_out, tm) < 2:
        tm = min(tm, _round_up(pl.cdiv(features_out, 2), 8))

    grid = (pl.cdiv(features_out, tm), pl.cdiv(features_in, tn))

    w_item = dtype.itemsize
    a_item = lora_A.dtype.itemsize
    b_item = lora_B.dtype.itemsize

    # lora_B fully resident: one tiny DMA for the whole grid instead of a
    # strided (tm, 3) transfer per row block.  Zero-pad rows to grid[0]*tm so
    # the in-kernel pl.ds row slice is always in bounds on ragged grids.  The
    # VMEM buffer pads the 3-lane axis to 128 lanes, so fall back to blocked B
    # if residency would cost more than ~8 MiB (very large features_out).
    padded_rows = grid[0] * tm
    b_resident_bytes = 2 * _round_up(padded_rows, 8) * 128 * b_item
    b_resident = b_resident_bytes <= (8 << 20)
    if b_resident:
        pad = padded_rows - features_out
        b_arr = jnp.pad(lora_B, ((0, pad), (0, 0))) if pad else lora_B
        b_spec = pl.BlockSpec((padded_rows, rank), lambda i, j: (0, 0))
        b_vmem = b_resident_bytes
    else:
        b_arr = lora_B
        b_spec = pl.BlockSpec((tm, rank), lambda i, j: (i, 0))
        b_vmem = 2 * _round_up(tm, 8) * 128 * b_item

    if w_buffers != 2:
        w_spec = pl.BlockSpec((tm, tn), lambda i, j: (i, j),
                              pipeline_mode=pl.Buffered(w_buffers))
    else:
        w_spec = pl.BlockSpec((tm, tn), lambda i, j: (i, j))
    a_spec = pl.BlockSpec((rank, tn), lambda i, j: (0, j))
    out_spec = pl.BlockSpec((tm, tn), lambda i, j: (i, j))

    # VMEM budget: W-in and out tiles dominate; leave headroom for in-kernel
    # f32 temporaries and compiler scratch, capped by physical VMEM per gen.
    tile_bytes = _round_up(tm, 8) * _round_up(tn, 128) * w_item
    vmem_needed = (w_buffers * tile_bytes        # W tiles
                   + 2 * tile_bytes              # out tiles (double-buffered)
                   + b_vmem                      # resident / blocked lora_B
                   + 2 * 8 * _round_up(tn, 128) * a_item)   # lora_A tiles
    vmem_cap = (56 << 20) if gen >= 7 else (100 << 20)
    vmem_limit = min(max(int(vmem_needed * 1.5) + (8 << 20), 32 << 20), vmem_cap)

    if gen >= 7 and grid[0] >= 2:
        dim_sem = (pltpu.CORE_PARALLEL, pltpu.PARALLEL)
    else:
        dim_sem = ("parallel", "parallel")

    native_add = (dtype == jnp.bfloat16) and gen >= 6

    bytes_accessed = (2 * features_out * features_in * w_item   # read W, write out
                      + rank * features_in * a_item
                      + features_out * rank * b_item)
    flops = features_out * features_in * (2 * rank + 1)

    kernel = functools.partial(_lora_kernel, scale=float(scale), rank=rank,
                               tm=tm, b_resident=b_resident,
                               native_add=native_add)

    return pl.pallas_call(
        kernel,
        out_shape=jax.ShapeDtypeStruct((features_out, features_in), dtype),
        grid_spec=pltpu.PrefetchScalarGridSpec(
            num_scalar_prefetch=0,
            grid=grid,
            in_specs=[w_spec, b_spec, a_spec],
            out_specs=out_spec,
        ),
        compiler_params=pltpu.CompilerParams(
            dimension_semantics=dim_sem,
            vmem_limit_bytes=vmem_limit),
        cost_estimate=pl.CostEstimate(flops=flops, transcendentals=0,
                                      bytes_accessed=bytes_accessed),
        input_output_aliases=({0: 0} if donate_original else {}),
    )(original_weights, b_arr, lora_A)


if __name__ == "__main__":
    # Deterministic in-script parameter construction matching the module's
    # __init__: lora_A ~ Normal(0, 1), lora_B zero-init (perturbed here so the
    # LoRA delta path is actually exercised), scale = alpha / rank.
    rank = 3
    alpha = 1
    scale = alpha / rank
    key = jax.random.PRNGKey(0)

    def make_inputs(k, features_out, features_in, dtype):
        k_w, k_a, k_b = jax.random.split(k, 3)
        w = jax.random.normal(k_w, (features_out, features_in),
                              dtype=jnp.float32).astype(dtype)
        a = jax.random.normal(k_a, (rank, features_in), dtype=jnp.float32)
        b = 0.01 * jax.random.normal(k_b, (features_out, rank),
                                     dtype=jnp.float32)
        return w, a, b

    def reference(w, a, b, s):
        delta = (b.astype(jnp.float32) @ a.astype(jnp.float32)) * s
        return (w.astype(jnp.float32) + delta).astype(w.dtype)

    checks = [
        # (features_out, features_in, dtype, atol, rtol)
        (256, 512, jnp.float32, 1e-5, 1e-5),     # small, single/few blocks
        (520, 1152, jnp.float32, 1e-5, 1e-5),    # ragged tiles, padded B rows
        (1032, 2304, jnp.float32, 1e-5, 1e-5),   # multi-block rows & columns
        (256, 512, jnp.bfloat16, 3e-2, 3e-2),    # bf16 weights (native add on v6e+)
    ]
    for idx, (fo, fi, dtype, atol, rtol) in enumerate(checks):
        key, sub = jax.random.split(key)
        w, a, b = make_inputs(sub, fo, fi, dtype)
        out = jax.block_until_ready(lora_forward(w, a, b, scale))
        ref = reference(w, a, b, scale)
        assert out.shape == (fo, fi) and out.dtype == w.dtype
        assert jnp.allclose(out.astype(jnp.float32), ref.astype(jnp.float32),
                            atol=atol, rtol=rtol), f"mismatch in check {idx}"

    print("KERNEL_OK")
</pallas_src>

<mosaic_0001>
module attributes {stable_mosaic.version = 11 : i64} {
  func.func @_lora_kernel(%arg0: i32, %arg1: i32, %arg2: memref<256x512xf32, #tpu.memory_space<vmem>>, %arg3: memref<256x3xf32, #tpu.memory_space<vmem>>, %arg4: memref<3x512xf32, #tpu.memory_space<vmem>>, %arg5: memref<256x512xf32, #tpu.memory_space<vmem>>) attributes {dimension_semantics = [#tpu.dimension_semantics<parallel>, #tpu.dimension_semantics<parallel>], iteration_bounds = array<i64: 1, 1>, scalar_prefetch = 0 : i64, scratch_operands = 0 : i64, tpu.core_type = #tpu.core_type<tc>, window_params = [{transform_indices = @transform_0, window_bounds = array<i64: 256, 512>}, {pipeline_mode = #tpu.pipeline_mode<synchronous>, transform_indices = @transform_1, window_bounds = array<i64: 256, 3>}, {transform_indices = @transform_2, window_bounds = array<i64: 3, 512>}, {transform_indices = @transform_3, window_bounds = array<i64: 256, 512>}]} {
    %c256_i32 = arith.constant 256 : i32
    %0 = arith.muli %arg0, %c256_i32 : i32
    %1 = tpu.assume_multiple %0, 8 : i32
    %2 = arith.index_cast %1 : i32 to index
    %c0 = arith.constant 0 : index
    %3 = vector.load %arg3[%2, %c0] : memref<256x3xf32, #tpu.memory_space<vmem>>, vector<256x3xf32>
    %c0_0 = arith.constant 0 : index
    %c0_1 = arith.constant 0 : index
    %4 = vector.load %arg4[%c0_0, %c0_1] : memref<3x512xf32, #tpu.memory_space<vmem>>, vector<3x512xf32>
    %5 = vector.extract_strided_slice %3 {offsets = [0, 0], sizes = [256, 1], strides = [1, 1]} : vector<256x3xf32> to vector<256x1xf32>
    %cst = arith.constant 0.333333343 : f32
    %6 = vector.broadcast %cst : f32 to vector<256x1xf32>
    %7 = arith.mulf %5, %6 : vector<256x1xf32>
    %8 = vector.extract_strided_slice %4 {offsets = [0, 0], sizes = [1, 512], strides = [1, 1]} : vector<3x512xf32> to vector<1x512xf32>
    %9 = vector.broadcast %7 : vector<256x1xf32> to vector<256x512xf32>
    %10 = vector.broadcast %8 : vector<1x512xf32> to vector<256x512xf32>
    %11 = arith.mulf %9, %10 : vector<256x512xf32>
    %12 = vector.extract_strided_slice %3 {offsets = [0, 1], sizes = [256, 1], strides = [1, 1]} : vector<256x3xf32> to vector<256x1xf32>
    %cst_2 = arith.constant 0.333333343 : f32
    %13 = vector.broadcast %cst_2 : f32 to vector<256x1xf32>
    %14 = arith.mulf %12, %13 : vector<256x1xf32>
    %15 = vector.extract_strided_slice %4 {offsets = [1, 0], sizes = [1, 512], strides = [1, 1]} : vector<3x512xf32> to vector<1x512xf32>
    %16 = vector.broadcast %14 : vector<256x1xf32> to vector<256x512xf32>
    %17 = vector.broadcast %15 : vector<1x512xf32> to vector<256x512xf32>
    %18 = arith.mulf %16, %17 : vector<256x512xf32>
    %19 = arith.addf %11, %18 : vector<256x512xf32>
    %20 = vector.extract_strided_slice %3 {offsets = [0, 2], sizes = [256, 1], strides = [1, 1]} : vector<256x3xf32> to vector<256x1xf32>
    %cst_3 = arith.constant 0.333333343 : f32
    %21 = vector.broadcast %cst_3 : f32 to vector<256x1xf32>
    %22 = arith.mulf %20, %21 : vector<256x1xf32>
    %23 = vector.extract_strided_slice %4 {offsets = [2, 0], sizes = [1, 512], strides = [1, 1]} : vector<3x512xf32> to vector<1x512xf32>
    %24 = vector.broadcast %22 : vector<256x1xf32> to vector<256x512xf32>
    %25 = vector.broadcast %23 : vector<1x512xf32> to vector<256x512xf32>
    %26 = arith.mulf %24, %25 : vector<256x512xf32>
    %27 = arith.addf %19, %26 : vector<256x512xf32>
    %c0_4 = arith.constant 0 : index
    %c0_5 = arith.constant 0 : index
    %28 = vector.load %arg2[%c0_4, %c0_5] : memref<256x512xf32, #tpu.memory_space<vmem>>, vector<256x512xf32>
    %29 = arith.addf %28, %27 : vector<256x512xf32>
    %c0_6 = arith.constant 0 : index
    %c0_7 = arith.constant 0 : index
    %30 = vector.load %arg5[%c0_6, %c0_7] : memref<256x512xf32, #tpu.memory_space<vmem>>, vector<256x512xf32>
    tpu.vector_store %arg5[%c0_6, %c0_7], %29 {strides = array<i32>} : memref<256x512xf32, #tpu.memory_space<vmem>>, vector<256x512xf32>,
    return
  }
  func.func @transform_0(%arg0: i32, %arg1: i32) -> (i32, i32) {
    %c0_i32 = arith.constant 0 : i32
    return %arg0, %arg1 : i32, i32
  }
  func.func @transform_1(%arg0: i32, %arg1: i32) -> (i32, i32) {
    %c0_i32 = arith.constant 0 : i32
    %c0_i32_0 = arith.constant 0 : i32
    %c0_i32_1 = arith.constant 0 : i32
    return %c0_i32, %c0_i32_0 : i32, i32
  }
  func.func @transform_2(%arg0: i32, %arg1: i32) -> (i32, i32) {
    %c0_i32 = arith.constant 0 : i32
    %c0_i32_0 = arith.constant 0 : i32
    return %c0_i32, %arg1 : i32, i32
  }
  func.func @transform_3(%arg0: i32, %arg1: i32) -> (i32, i32) {
    %c0_i32 = arith.constant 0 : i32
    return %arg0, %arg1 : i32, i32
  }
}

</mosaic_0001>

<bundles_post_ra>
// kernel: tpu_custom_call.1
= control target key start
LH: loop header
LB: loop body
LE: loop exit
PB: predicated region body
PF: predicated region fallthrough
CT: control target
= control target key end

     0   :  { %8 = vsyncpa [#allocation3], 0  ;;  %s3364_s0 = inlined_call_operand.hbm [shape: f32[256,512], index: 0, kind: input, shape index: {}]   ;;  %s3365_s1 = inlined_call_operand.vmem [shape: f32[256,3], index: 1, kind: input, shape index: {}]   ;;  %s3366_s2 = inlined_call_operand.vmem [shape: f32[3,512], index: 2, kind: input, shape index: {}]   ;;  %s3367_s3 = inlined_call_operand.hbm [shape: f32[256,512], index: 3, kind: output, shape index: {}]  }
   0x1   :  { %9 = vsyncpa [#allocation4], 0  ;;  %s1725_s12 = smov [#allocation2]   ;;  %s1677_s16 = scalar_lea.hbm %s3364_s0, 16384 }
   0x2   :  { %s15_s13 = sshll.u32 %s1725_s12, 4  ;;  %p1678_p0 = scmp.ne.s32.totalorder %s3364_s0, %s1677_s16  ;;  %s16_s13 = int_to_ptr.vmem [resolvable:$true] %s15_s13 }
   0x3   :  { %p1681_p1 = scmp.lt.u32.totalorder %s1677_s16, %s3364_s0 }
   0x5   :  { %p1683_p2 = pnand %p1681_p1, %p1678_p0 }
   0x7   :  { %1686 = shalt.err (!%p1683_p2)
}
   0x8   :  { %s1687_s21 = scalar_lea.vmem %s16_s13, 16384  ;;  %p1692_p4 = scmp.lt.s32.totalorder %s16_s13, %s16_s13 }
   0x9   :  { %p1688_p3 = scmp.ne.s32.totalorder %s16_s13, %s1687_s21  ;;  %p1693_p5 = scmp.lt.s32.totalorder %s1687_s21, %s1687_s21 }
   0xb   :  { %p1694_p6 = por %p1693_p5, %p1692_p4 }
   0xd   :  { %p1695_p7 = pnand %p1694_p6, %p1688_p3 }
   0xf   :  { %1698 = shalt.err (!%p1695_p7)
}
  0x10   :  { %s1726_s22 = smov 512   ;;  %s1727_s23 = smov 32  }
  0x11   :  { %21 = dma.hbm_to_vmem [thread:$0]  %s3364_s0, 16384, %s16_s13, [#allocation3], %s1726_s22, %s1726_s22, %s1727_s23  }
  0x12   :  { %1721 = dma.done.wait [#allocation3], 16384  }
  0x13   :  { %1722 = vsyncadd [#allocation3], 4294950912  ;;  %v1728_v0 = vmov 0   ;;  %v33_v1 = vld [vmem:[%s3365_s1 + $0x10] sm:$0xff]  ;;  %v31_v2 = vld [vmem:[%s3365_s1] sm:$0xff] }
  0x14   :  { %1672 = vset.pattern.permute.xlu1 %v1728_v0  ;;  %1671 = vset.pattern.permute.xlu0 %v1728_v0  ;;  %v34_v3 = vld [vmem:[%s3365_s1 + $0x18] sm:$0xff]  ;;  %v1776_v4 = vmul.f32 0.33333334, %v33_v1  ;;  %v1778_v5 = vmul.f32 0.33333334, %v31_v2  ;;  %v32_v6 = vld [vmem:[%s3365_s1 + $0x8] sm:$0xff] }
  0x15   :  { %v1785_v7 = vmul.f32 0.33333334, %v34_v3  ;;  %v1787_v8 = vmul.f32 0.33333334, %v32_v6  ;;  %v36_v9 = vld [vmem:[%s3365_s1 + $0x28] sm:$0xff]  ;;  %v35_v10 = vld [vmem:[%s3365_s1 + $0x20] sm:$0xff] }
  0x16   :  { %109 = vperm.xlu1 %1672, %v1776_v4   ;;  %99 = vperm.xlu0 %1671, %v1778_v5   ;;  %v1797_v11 = vmul.f32 0.33333334, %v36_v9  ;;  %v1799_v12 = vmul.f32 0.33333334, %v35_v10  ;;  %v38_v13 = vld [vmem:[%s3365_s1 + $0x38] sm:$0xff]  ;;  %v37_v14 = vld [vmem:[%s3365_s1 + $0x30] sm:$0xff] }
  0x17   :  { %v1809_v15 = vmul.f32 0.33333334, %v38_v13  ;;  %v1811_v16 = vmul.f32 0.33333334, %v37_v14  ;;  %v40_v17 = vld [vmem:[%s3365_s1 + $0x48] sm:$0xff]  ;;  %v39_v18 = vld [vmem:[%s3365_s1 + $0x40] sm:$0xff] }
  0x18   :  { %v1821_v19 = vmul.f32 0.33333334, %v40_v17  ;;  %v1823_v20 = vmul.f32 0.33333334, %v39_v18  ;;  %v42_v21 = vld [vmem:[%s3365_s1 + $0x58] sm:$0xff]  ;;  %v41_v22 = vld [vmem:[%s3365_s1 + $0x50] sm:$0xff] }
  0x19   :  { %v1833_v23 = vmul.f32 0.33333334, %v42_v21  ;;  %v1835_v24 = vmul.f32 0.33333334, %v41_v22  ;;  %v44_v25 = vld [vmem:[%s3365_s1 + $0x68] sm:$0xff]  ;;  %v43_v26 = vld [vmem:[%s3365_s1 + $0x60] sm:$0xff] }
  0x1a   :  { %114 = vperm.xlu1 %1672, %v1785_v7   ;;  %104 = vperm.xlu0 %1671, %v1787_v8   ;;  %v1845_v27 = vmul.f32 0.33333334, %v44_v25  ;;  %v1847_v28 = vmul.f32 0.33333334, %v43_v26  ;;  %v46_v29 = vld [vmem:[%s3365_s1 + $0x78] sm:$0xff]  ;;  %v45_v30 = vld [vmem:[%s3365_s1 + $0x70] sm:$0xff] }
  0x1b   :  { %v1857_v31 = vmul.f32 0.33333334, %v46_v29  ;;  %v1859_v32 = vmul.f32 0.33333334, %v45_v30  ;;  %v48_v33 = vld [vmem:[%s3365_s1 + $0x88] sm:$0xff]  ;;  %v47_v34 = vld [vmem:[%s3365_s1 + $0x80] sm:$0xff] }
  0x1c   :  { %v1869_v35 = vmul.f32 0.33333334, %v48_v33  ;;  %v1871_v36 = vmul.f32 0.33333334, %v47_v34  ;;  %v50_v37 = vld [vmem:[%s3365_s1 + $0x98] sm:$0xff]  ;;  %v49_v38 = vld [vmem:[%s3365_s1 + $0x90] sm:$0xff] }
  0x1d   :  { %v1881_v39 = vmul.f32 0.33333334, %v50_v37  ;;  %v1883_v40 = vmul.f32 0.33333334, %v49_v38  ;;  %v52_v41 = vld [vmem:[%s3365_s1 + $0xa8] sm:$0xff]  ;;  %v51_v42 = vld [vmem:[%s3365_s1 + $0xa0] sm:$0xff] }
  0x1e   :  { %124 = vperm.xlu1 %1672, %v1797_v11   ;;  %119 = vperm.xlu0 %1671, %v1799_v12   ;;  %v1893_v43 = vmul.f32 0.33333334, %v52_v41  ;;  %v1895_v44 = vmul.f32 0.33333334, %v51_v42  ;;  %v54_v45 = vld [vmem:[%s3365_s1 + $0xb8] sm:$0xff]  ;;  %v53_v46 = vld [vmem:[%s3365_s1 + $0xb0] sm:$0xff] }
  0x1f   :  { %v1905_v47 = vmul.f32 0.33333334, %v54_v45  ;;  %v1907_v48 = vmul.f32 0.33333334, %v53_v46  ;;  %v56_v49 = vld [vmem:[%s3365_s1 + $0xc8] sm:$0xff]  ;;  %v55_v50 = vld [vmem:[%s3365_s1 + $0xc0] sm:$0xff] }
  0x20   :  { %v1917_v51 = vmul.f32 0.33333334, %v56_v49  ;;  %v1919_v52 = vmul.f32 0.33333334, %v55_v50  ;;  %v58_v53 = vld [vmem:[%s3365_s1 + $0xd8] sm:$0xff]  ;;  %v57_v54 = vld [vmem:[%s3365_s1 + $0xd0] sm:$0xff] }
  0x21   :  { %v1929_v55 = vmul.f32 0.33333334, %v58_v53  ;;  %v1931_v56 = vmul.f32 0.33333334, %v57_v54  ;;  %v60_v57 = vld [vmem:[%s3365_s1 + $0xe8] sm:$0xff]  ;;  %v59_v58 = vld [vmem:[%s3365_s1 + $0xe0] sm:$0xff] }
  0x22   :  { %134 = vperm.xlu1 %1672, %v1809_v15   ;;  %129 = vperm.xlu0 %1671, %v1811_v16   ;;  %v1941_v59 = vmul.f32 0.33333334, %v60_v57  ;;  %v1943_v60 = vmul.f32 0.33333334, %v59_v58  ;;  %v62_v61 = vld [vmem:[%s3365_s1 + $0xf8] sm:$0xff]  ;;  %v61_v62 = vld [vmem:[%s3365_s1 + $0xf0] sm:$0xff] }
  0x23   :  { %v1953_v63 = vmul.f32 0.33333334, %v62_v61  ;;  %v1955_v0 = vmul.f32 0.33333334, %v61_v62  ;;  %v1729_v1 = vmov 1   ;;  %v1730_v6 = vmov 2  }
  0x26   :  { %144 = vperm.xlu1 %1672, %v1821_v19   ;;  %139 = vperm.xlu0 %1671, %v1823_v20  }
  0x2a   :  { %154 = vperm.xlu1 %1672, %v1833_v23   ;;  %149 = vperm.xlu0 %1671, %v1835_v24  }
  0x2e   :  { %164 = vperm.xlu1 %1672, %v1845_v27   ;;  %159 = vperm.xlu0 %1671, %v1847_v28  }
  0x32   :  { %174 = vperm.xlu1 %1672, %v1857_v31   ;;  %169 = vperm.xlu0 %1671, %v1859_v32  }
  0x36   :  { %184 = vperm.xlu1 %1672, %v1869_v35   ;;  %179 = vperm.xlu0 %1671, %v1871_v36  }
  0x3a   :  { %194 = vperm.xlu1 %1672, %v1881_v39   ;;  %189 = vperm.xlu0 %1671, %v1883_v40  }
  0x3e   :  { %204 = vperm.xlu1 %1672, %v1893_v43   ;;  %199 = vperm.xlu0 %1671, %v1895_v44  }
  0x42   :  { %214 = vperm.xlu1 %1672, %v1905_v47   ;;  %209 = vperm.xlu0 %1671, %v1907_v48  }
  0x46   :  { %224 = vperm.xlu1 %1672, %v1917_v51   ;;  %219 = vperm.xlu0 %1671, %v1919_v52  }
  0x4a   :  { %234 = vperm.xlu1 %1672, %v1929_v55   ;;  %229 = vperm.xlu0 %1671, %v1931_v56  }
  0x4e   :  { %244 = vperm.xlu1 %1672, %v1941_v59   ;;  %239 = vperm.xlu0 %1671, %v1943_v60  }
  0x52   :  { %254 = vperm.xlu1 %1672, %v1953_v63   ;;  %249 = vperm.xlu0 %1671, %v1955_v0  }
  0x56   :  { %1674 = vset.pattern.permute.xlu1 %v1729_v1  ;;  %1673 = vset.pattern.permute.xlu0 %v1729_v1 }
  0x57   :  { %428 = vperm.xlu1 %1674, %v1787_v8   ;;  %424 = vperm.xlu0 %1673, %v1778_v5  }
  0x5b   :  { %432 = vperm.xlu1 %1674, %v1776_v4   ;;  %436 = vperm.xlu0 %1673, %v1785_v7  }
  0x5f   :  { %440 = vperm.xlu1 %1674, %v1799_v12   ;;  %444 = vperm.xlu0 %1673, %v1797_v11  }
  0x63   :  { %448 = vperm.xlu1 %1674, %v1811_v16   ;;  %452 = vperm.xlu0 %1673, %v1809_v15  }
  0x67   :  { %456 = vperm.xlu1 %1674, %v1823_v20   ;;  %460 = vperm.xlu0 %1673, %v1821_v19  }
  0x6b   :  { %464 = vperm.xlu1 %1674, %v1835_v24   ;;  %468 = vperm.xlu0 %1673, %v1833_v23  }
  0x6f   :  { %472 = vperm.xlu1 %1674, %v1847_v28   ;;  %476 = vperm.xlu0 %1673, %v1845_v27  }
  0x73   :  { %480 = vperm.xlu1 %1674, %v1859_v32   ;;  %484 = vperm.xlu0 %1673, %v1857_v31  }
  0x77   :  { %488 = vperm.xlu1 %1674, %v1871_v36   ;;  %492 = vperm.xlu0 %1673, %v1869_v35  }
  0x7b   :  { %496 = vperm.xlu1 %1674, %v1883_v40   ;;  %500 = vperm.xlu0 %1673, %v1881_v39  }
  0x7f   :  { %504 = vperm.xlu1 %1674, %v1895_v44   ;;  %508 = vperm.xlu0 %1673, %v1893_v43  }
  0x83   :  { %512 = vperm.xlu1 %1674, %v1907_v48   ;;  %516 = vperm.xlu0 %1673, %v1905_v47  }
  0x87   :  { %520 = vperm.xlu1 %1674, %v1919_v52   ;;  %524 = vperm.xlu0 %1673, %v1917_v51  }
  0x8b   :  { %528 = vperm.xlu1 %1674, %v1931_v56   ;;  %532 = vperm.xlu0 %1673, %v1929_v55  }
  0x8f   :  { %536 = vperm.xlu1 %1674, %v1943_v60   ;;  %540 = vperm.xlu0 %1673, %v1941_v59  }
  0x93   :  { %544 = vperm.xlu1 %1674, %v1955_v0   ;;  %548 = vperm.xlu0 %1673, %v1953_v63  }
  0x95   :  { %v1991_v2 = vpop.permute.xlu1 %109  ;;  %v1993_v3 = vpop.permute.xlu0 %99 }
  0x97   :  { %1675 = vset.pattern.permute.xlu1 %v1730_v6  ;;  %1676 = vset.pattern.permute.xlu0 %v1730_v6 }
  0x98   :  { %844 = vperm.xlu1 %1675, %v1778_v5   ;;  %848 = vperm.xlu0 %1676, %v1787_v8   ;;  %v259_v8 = vlaneseq }
  0x99   :  { %v1997_v9 = vpop.permute.xlu1 %114  ;;  %v1999_v10 = vpop.permute.xlu0 %104 }
  0x9a   :  { %v260_v18 = vshrl.u32 %v259_v8, 7 }
  0x9c   :  { %852 = vperm.xlu1 %1675, %v1776_v4   ;;  %860 = vperm.xlu0 %1676, %v1799_v12   ;;  %v261_v21 = vsub.s32 0, %v260_v18  ;;  %v265_v22 = vsub.s32 4, %v260_v18  ;;  %v553_v25 = vsub.s32 1, %v260_v18  ;;  %v557_v26 = vsub.s32 5, %v260_v18 }
  0x9d   :  { %v2003_v13 = vpop.permute.xlu1 %124  ;;  %v2005_v14 = vpop.permute.xlu0 %119 }
  0xa0   :  { %856 = vperm.xlu1 %1675, %v1785_v7   ;;  %868 = vperm.xlu0 %1676, %v1811_v16  }
  0xa1   :  { %v2009_v17 = vpop.permute.xlu1 %134  ;;  %v2011_v5 = vpop.permute.xlu0 %129 }
  0xa4   :  { %864 = vperm.xlu1 %1675, %v1797_v11   ;;  %876 = vperm.xlu0 %1676, %v1823_v20   ;;  %v63_v11 = vld [vmem:[%s3366_s2] sm:$0x77]  ;;  %v64_v20 = vld [vmem:[%s3366_s2 + $0x8] sm:$0x77]  ;;  %s1731_s2 = smov [#allocation5]  }
  0xa5   :  { %v2015_v4 = vpop.permute.xlu1 %144  ;;  %v2017_v12 = vpop.permute.xlu0 %139  ;;  %v262_v29 = vrot.slane %v63_v11, %v261_v21  ;;  %v266_v30 = vrot.slane %v63_v11, %v265_v22  ;;  %v270_v33 = vrot.slane %v64_v20, %v261_v21  ;;  %v274_v34 = vrot.slane %v64_v20, %v265_v22  ;;  %s1652_s13 = sshll.u32 %s1731_s2, 4  ;;  %s1653_s13 = int_to_ptr.vmem [resolvable:$true] %s1652_s13 }
  0xa6   :  { %v554_v41 = vrot.slane %v63_v11, %v553_v25  ;;  %v558_v42 = vrot.slane %v63_v11, %v557_v26  ;;  %v562_v45 = vrot.slane %v64_v20, %v553_v25  ;;  %v566_v46 = vrot.slane %v64_v20, %v557_v26  ;;  %s1699_s14 = scalar_lea.vmem %s1653_s13, 16384  ;;  %p1704_p9 = scmp.lt.s32.totalorder %s1653_s13, %s1653_s13 }
  0xa7   :  { %v2043_v49 = vrot.slane %v262_v29, %v261_v21  ;;  %v2045_v50 = vrot.slane %v266_v30, %v261_v21  ;;  %v2047_v53 = vrot.slane %v270_v33, %v261_v21  ;;  %v2049_v54 = vrot.slane %v274_v34, %v261_v21  ;;  %p1700_p8 = scmp.ne.s32.totalorder %s1653_s13, %s1699_s14  ;;  %p1705_p10 = scmp.lt.s32.totalorder %s1699_s14, %s1699_s14 }
  0xa8   :  { %872 = vperm.xlu1 %1675, %v1809_v15   ;;  %884 = vperm.xlu0 %1676, %v1835_v24   ;;  %v2057_v1 = vrot.slane %v554_v41, %v553_v25  ;;  %v2059_v6 = vrot.slane %v558_v42, %v553_v25  ;;  %v2061_v8 = vrot.slane %v562_v45, %v553_v25 }
  0xa9   :  { %v2021_v7 = vpop.permute.xlu1 %154  ;;  %v2023_v16 = vpop.permute.xlu0 %149  ;;  %v2075_v21 = vmul.f32 %v2047_v53, %v1991_v2  ;;  %v2079_v22 = vmul.f32 %v2049_v54, %v1991_v2  ;;  %v2095_v26 = vmul.f32 %v2049_v54, %v1993_v3  ;;  %v2125_v41 = vmul.f32 %v2049_v54, %v1997_v9  ;;  %p1706_p11 = por %p1705_p10, %p1704_p9 }
  0xaa   :  { %v2133_v42 = vmul.f32 %v2045_v50, %v1999_v10  ;;  %v2137_v45 = vmul.f32 %v2047_v53, %v1999_v10 }
  0xab   :  { %p1707_p12 = pnand %p1706_p11, %p1700_p8 }
  0xac   :  { %880 = vperm.xlu1 %1675, %v1821_v19   ;;  %892 = vperm.xlu0 %1676, %v1847_v28   ;;  %v973_v19 = vsub.s32 2, %v260_v18  ;;  %v977_v28 = vsub.s32 6, %v260_v18  ;;  %v2063_v18 = vrot.slane %v566_v46, %v553_v25  ;;  %v2091_v25 = vmul.f32 %v2047_v53, %v1993_v3 }
  0xad   :  { %v2033_v15 = vpop.permute.xlu1 %164  ;;  %v2035_v24 = vpop.permute.xlu0 %159  ;;  %v2141_v46 = vmul.f32 %v2049_v54, %v1999_v10 }
  0xae   :  { %v974_v57 = vrot.slane %v63_v11, %v973_v19  ;;  %v978_v58 = vrot.slane %v63_v11, %v977_v28  ;;  %v982_v61 = vrot.slane %v64_v20, %v973_v19  ;;  %v986_v62 = vrot.slane %v64_v20, %v977_v28 }
  0xaf   :  { %v2083_v11 = vmul.f32 %v2043_v49, %v1993_v3  ;;  %v2087_v20 = vmul.f32 %v2045_v50, %v1993_v3  ;;  %v2113_v3 = vmul.f32 %v2043_v49, %v1997_v9 }
  0xb0   :  { %888 = vperm.xlu1 %1675, %v1833_v23   ;;  %900 = vperm.xlu0 %1676, %v1859_v32   ;;  %v2103_v30 = vrot.slane %v974_v57, %v973_v19  ;;  %v2105_v33 = vrot.slane %v978_v58, %v973_v19  ;;  %v2107_v34 = vrot.slane %v982_v61, %v973_v19 }
  0xb1   :  { %v2039_v37 = vpop.permute.xlu1 %174  ;;  %v2041_v38 = vpop.permute.xlu0 %169  ;;  %v2109_v28 = vrot.slane %v986_v62, %v973_v19  ;;  %v2129_v19 = vmul.f32 %v2043_v49, %v1999_v10  ;;  %v2149_v57 = vmul.f32 %v2045_v50, %v2003_v13  ;;  %v2153_v58 = vmul.f32 %v2047_v53, %v2003_v13 }
  0xb2   :  { %3372 = vst [vmem:[#allocation8_spill] sm:$0xff] %v2103_v30  ;;  %3373 = vst [vmem:[#allocation9_spill] sm:$0xff] %v2105_v33  ;;  %v2157_v61 = vmul.f32 %v2049_v54, %v2003_v13  ;;  %v2162_v10 = vmul.f32 %v2043_v49, %v2005_v14  ;;  %v2166_v62 = vmul.f32 %v2045_v50, %v2005_v14 }
  0xb3   :  { %3374 = vst [vmem:[#allocation10_spill] sm:$0xff] %v2107_v34  ;;  %3375 = vst [vmem:[#allocation11_spill] sm:$0xff] %v2109_v28  ;;  %v2170_v28 = vmul.f32 %v2047_v53, %v2005_v14  ;;  %v2174_v34 = vmul.f32 %v2049_v54, %v2005_v14  ;;  %v2193_v14 = vmul.f32 %v2043_v49, %v2009_v17 }
  0xb4   :  { %896 = vperm.xlu1 %1675, %v1845_v27   ;;  %908 = vperm.xlu0 %1676, %v1871_v36   ;;  %v2067_v27 = vmul.f32 %v2043_v49, %v1991_v2  ;;  %v2071_v36 = vmul.f32 %v2045_v50, %v1991_v2  ;;  %3376 = vst [vmem:[#allocation12_spill] sm:$0xff] %v2166_v62 }
  0xb5   :  { %v2053_v23 = vpop.permute.xlu1 %184  ;;  %v2055_v32 = vpop.permute.xlu0 %179  ;;  %3377 = vst [vmem:[#allocation13_spill] sm:$0xff] %v2170_v28 }
  0xb8   :  { %904 = vperm.xlu1 %1675, %v1857_v31   ;;  %916 = vperm.xlu0 %1676, %v1883_v40   ;;  %v2117_v31 = vmul.f32 %v2045_v50, %v1997_v9  ;;  %v2121_v40 = vmul.f32 %v2047_v53, %v1997_v9  ;;  %v2145_v9 = vmul.f32 %v2043_v49, %v2003_v13 }
  0xb9   :  { %v2099_v2 = vpop.permute.xlu1 %194  ;;  %v2101_v29 = vpop.permute.xlu0 %189 }
  0xbc   :  { %912 = vperm.xlu1 %1675, %v1869_v35   ;;  %924 = vperm.xlu0 %1676, %v1895_v44   ;;  %v2197_v44 = vmul.f32 %v2045_v50, %v2009_v17 }
  0xbd   :  { %v205_v13 = vpop.permute.xlu1 %204  ;;  %v2177_v35 = vpop.permute.xlu0 %199 }
  0xbe   :  { %v2180_v33 = vmul.f32 %v2043_v49, %v205_v13  ;;  %v2183_v30 = vmul.f32 %v2045_v50, %v205_v13  ;;  %v2186_v62 = vmul.f32 %v2047_v53, %v205_v13  ;;  %v2189_v28 = vmul.f32 %v2049_v54, %v205_v13  ;;  %3382 = vst [vmem:[#allocation18_spill] sm:$0xff] %v2197_v44 }
  0xbf   :  { %v2209_v13 = vmul.f32 %v2043_v49, %v2011_v5  ;;  %v2221_v44 = vmul.f32 %v2049_v54, %v2011_v5 }
  0xc0   :  { %3378 = vst [vmem:[#allocation14_spill] sm:$0xff] %v2180_v33  ;;  %3379 = vst [vmem:[#allocation15_spill] sm:$0xff] %v2183_v30  ;;  %v2201_v33 = vmul.f32 %v2047_v53, %v2009_v17  ;;  %v2205_v30 = vmul.f32 %v2049_v54, %v2009_v17  ;;  %920 = vperm.xlu1 %1675, %v1881_v39   ;;  %v2226_v17 = vmul.f32 %v2043_v49, %v2015_v4 }
  0xc1   :  { %3380 = vst [vmem:[#allocation16_spill] sm:$0xff] %v2186_v62  ;;  %3381 = vst [vmem:[#allocation17_spill] sm:$0xff] %v2189_v28  ;;  %v2213_v28 = vmul.f32 %v2045_v50, %v2011_v5  ;;  %v2217_v62 = vmul.f32 %v2047_v53, %v2011_v5  ;;  %932 = vperm.xlu0 %1676, %v1907_v48   ;;  %v215_v5 = vpop.permute.xlu1 %214  ;;  %v2241_v39 = vpop.permute.xlu0 %209  ;;  %v2261_v48 = vmul.f32 %v2045_v50, %v2017_v12 }
  0xc2   :  { %3383 = vst [vmem:[#allocation19_spill] sm:$0xff] %v2209_v13  ;;  %3386 = vst [vmem:[#allocation22_spill] sm:$0xff] %v2221_v44  ;;  %v2230_v13 = vmul.f32 %v2045_v50, %v2015_v4  ;;  %v2244_v44 = vmul.f32 %v2043_v49, %v215_v5 }
  0xc3   :  { %3384 = vst [vmem:[#allocation20_spill] sm:$0xff] %v2213_v28  ;;  %3385 = vst [vmem:[#allocation21_spill] sm:$0xff] %v2217_v62  ;;  %v2234_v28 = vmul.f32 %v2047_v53, %v2015_v4  ;;  %v2238_v62 = vmul.f32 %v2049_v54, %v2015_v4  ;;  %v2257_v4 = vmul.f32 %v2043_v49, %v2017_v12 }
  0xc4   :  { %3387 = vst [vmem:[#allocation23_spill] sm:$0xff] %v2226_v17  ;;  %3388 = vst [vmem:[#allocation24_spill] sm:$0xff] %v2230_v13  ;;  %v2247_v17 = vmul.f32 %v2045_v50, %v215_v5  ;;  %v2250_v13 = vmul.f32 %v2047_v53, %v215_v5  ;;  %928 = vperm.xlu1 %1675, %v1893_v43  }
  0xc5   :  { %3389 = vst [vmem:[#allocation25_spill] sm:$0xff] %v2234_v28  ;;  %3390 = vst [vmem:[#allocation26_spill] sm:$0xff] %v2238_v62  ;;  %v2253_v28 = vmul.f32 %v2049_v54, %v215_v5  ;;  %v2273_v5 = vmul.f32 %v2043_v49, %v2021_v7  ;;  %v2285_v62 = vmul.f32 %v2049_v54, %v2021_v7  ;;  %940 = vperm.xlu0 %1676, %v1919_v52   ;;  %v220_v43 = vpop.permute.xlu0 %219 }
  0xc6   :  { %3391 = vst [vmem:[#allocation27_spill] sm:$0xff] %v2244_v44  ;;  %3392 = vst [vmem:[#allocation28_spill] sm:$0xff] %v2247_v17  ;;  %v2265_v44 = vmul.f32 %v2047_v53, %v2017_v12  ;;  %v2269_v17 = vmul.f32 %v2049_v54, %v2017_v12  ;;  %v2290_v12 = vmul.f32 %v2043_v49, %v2023_v16 }
  0xc7   :  { %3393 = vst [vmem:[#allocation29_spill] sm:$0xff] %v2250_v13  ;;  %3394 = vst [vmem:[#allocation30_spill] sm:$0xff] %v2253_v28  ;;  %v2277_v28 = vmul.f32 %v2045_v50, %v2021_v7  ;;  %v2281_v13 = vmul.f32 %v2047_v53, %v2021_v7  ;;  %v225_v7 = vpop.permute.xlu1 %224  ;;  %v2324_v52 = vmul.f32 %v2047_v53, %v220_v43 }
  0xc8   :  { %3395 = vst [vmem:[#allocation31_spill] sm:$0xff] %v2269_v17  ;;  %3396 = vst [vmem:[#allocation32_spill] sm:$0xff] %v2273_v5  ;;  %v2294_v5 = vmul.f32 %v2045_v50, %v2023_v16  ;;  %v2315_v17 = vmul.f32 %v2049_v54, %v225_v7  ;;  %936 = vperm.xlu1 %1675, %v1905_v47  }
  0xc9   :  { %3397 = vst [vmem:[#allocation33_spill] sm:$0xff] %v2277_v28  ;;  %3398 = vst [vmem:[#allocation34_spill] sm:$0xff] %v2281_v13  ;;  %v2298_v28 = vmul.f32 %v2047_v53, %v2023_v16  ;;  %v2302_v13 = vmul.f32 %v2049_v54, %v2023_v16  ;;  %v2321_v16 = vmul.f32 %v2045_v50, %v220_v43  ;;  %948 = vperm.xlu0 %1676, %v1931_v56   ;;  %v230_v47 = vpop.permute.xlu0 %229 }
  0xca   :  { %3399 = vst [vmem:[#allocation35_spill] sm:$0xff] %v2285_v62  ;;  %3400 = vst [vmem:[#allocation36_spill] sm:$0xff] %v2290_v12  ;;  %v2306_v62 = vmul.f32 %v2043_v49, %v225_v7  ;;  %v2309_v12 = vmul.f32 %v2045_v50, %v225_v7  ;;  %v2382_v56 = vmul.f32 %v2047_v53, %v230_v47 }
  0xcb   :  { %3401 = vst [vmem:[#allocation37_spill] sm:$0xff] %v2294_v5  ;;  %3402 = vst [vmem:[#allocation38_spill] sm:$0xff] %v2298_v28  ;;  %v2312_v5 = vmul.f32 %v2047_v53, %v225_v7  ;;  %v2318_v28 = vmul.f32 %v2043_v49, %v220_v43  ;;  %v2335_v7 = vmul.f32 %v2045_v50, %v2033_v15 }
  0xcc   :  { %3403 = vst [vmem:[#allocation39_spill] sm:$0xff] %v2306_v62  ;;  %3404 = vst [vmem:[#allocation40_spill] sm:$0xff] %v2309_v12  ;;  %v2327_v62 = vmul.f32 %v2049_v54, %v220_v43  ;;  %v2331_v12 = vmul.f32 %v2043_v49, %v2033_v15  ;;  %v2348_v43 = vmul.f32 %v2043_v49, %v2035_v24  ;;  %944 = vperm.xlu1 %1675, %v1917_v51  }
  0xcd   :  { %3405 = vst [vmem:[#allocation41_spill] sm:$0xff] %v2312_v5  ;;  %3406 = vst [vmem:[#allocation42_spill] sm:$0xff] %v2315_v17  ;;  %v2339_v17 = vmul.f32 %v2047_v53, %v2033_v15  ;;  %v2343_v5 = vmul.f32 %v2049_v54, %v2033_v15  ;;  %v235_v15 = vpop.permute.xlu1 %234  ;;  %956 = vperm.xlu0 %1676, %v1943_v60   ;;  %v240_v51 = vpop.permute.xlu0 %239 }
  0xce   :  { %3407 = vst [vmem:[#allocation43_spill] sm:$0xff] %v2318_v28  ;;  %3408 = vst [vmem:[#allocation44_spill] sm:$0xff] %v2321_v16  ;;  %v2360_v16 = vmul.f32 %v2049_v54, %v2035_v24  ;;  %v2364_v28 = vmul.f32 %v2043_v49, %v235_v15  ;;  %v2440_v60 = vmul.f32 %v2047_v53, %v240_v51 }
  0xcf   :  { %3409 = vst [vmem:[#allocation45_spill] sm:$0xff] %v2324_v52  ;;  %3410 = vst [vmem:[#allocation46_spill] sm:$0xff] %v2327_v62  ;;  %v2352_v62 = vmul.f32 %v2045_v50, %v2035_v24  ;;  %v2356_v52 = vmul.f32 %v2047_v53, %v2035_v24  ;;  %v2379_v24 = vmul.f32 %v2045_v50, %v230_v47 }
  0xd0   :  { %3411 = vst [vmem:[#allocation47_spill] sm:$0xff] %v2331_v12  ;;  %3412 = vst [vmem:[#allocation48_spill] sm:$0xff] %v2335_v7  ;;  %v2373_v7 = vmul.f32 %v2049_v54, %v235_v15  ;;  %v2376_v12 = vmul.f32 %v2043_v49, %v230_v47  ;;  %952 = vperm.xlu1 %1675, %v1929_v55  }
  0xd1   :  { %3413 = vst [vmem:[#allocation49_spill] sm:$0xff] %v2339_v17  ;;  %3414 = vst [vmem:[#allocation50_spill] sm:$0xff] %v2343_v5  ;;  %v2367_v5 = vmul.f32 %v2045_v50, %v235_v15  ;;  %v2370_v17 = vmul.f32 %v2047_v53, %v235_v15  ;;  %v2393_v15 = vmul.f32 %v2045_v50, %v2039_v37  ;;  %964 = vperm.xlu0 %1676, %v1955_v0   ;;  %v250_v55 = vpop.permute.xlu0 %249 }
  0xd2   :  { %3415 = vst [vmem:[#allocation51_spill] sm:$0xff] %v2364_v28  ;;  %3418 = vst [vmem:[#allocation54_spill] sm:$0xff] %v2373_v7  ;;  %v2385_v28 = vmul.f32 %v2049_v54, %v230_v47  ;;  %v2397_v7 = vmul.f32 %v2047_v53, %v2039_v37  ;;  %v2406_v47 = vmul.f32 %v2043_v49, %v2041_v38 }
  0xd3   :  { %3416 = vst [vmem:[#allocation52_spill] sm:$0xff] %v2367_v5  ;;  %3417 = vst [vmem:[#allocation53_spill] sm:$0xff] %v2370_v17  ;;  %v2389_v5 = vmul.f32 %v2043_v49, %v2039_v37  ;;  %v2401_v17 = vmul.f32 %v2049_v54, %v2039_v37  ;;  %v245_v37 = vpop.permute.xlu1 %244  ;;  %v2498_v0 = vmul.f32 %v2047_v53, %v250_v55 }
  0xd4   :  { %3419 = vst [vmem:[#allocation55_spill] sm:$0xff] %v2376_v12  ;;  %3420 = vst [vmem:[#allocation56_spill] sm:$0xff] %v2379_v24  ;;  %v2418_v24 = vmul.f32 %v2049_v54, %v2041_v38  ;;  %v2422_v12 = vmul.f32 %v2043_v49, %v245_v37  ;;  %960 = vperm.xlu1 %1675, %v1941_v59   ;;  %v2542_v59 = vmul.f32 %v2045_v50, %v2177_v35 }
  0xd5   :  { %3421 = vst [vmem:[#allocation57_spill] sm:$0xff] %v2382_v56  ;;  %3422 = vst [vmem:[#allocation58_spill] sm:$0xff] %v2385_v28  ;;  %v2410_v28 = vmul.f32 %v2045_v50, %v2041_v38  ;;  %v2414_v56 = vmul.f32 %v2047_v53, %v2041_v38  ;;  %v2437_v38 = vmul.f32 %v2045_v50, %v240_v51 }
  0xd6   :  { %3423 = vst [vmem:[#allocation59_spill] sm:$0xff] %v2389_v5  ;;  %3424 = vst [vmem:[#allocation60_spill] sm:$0xff] %v2393_v15  ;;  %v2431_v15 = vmul.f32 %v2049_v54, %v245_v37  ;;  %v2434_v5 = vmul.f32 %v2043_v49, %v240_v51 }
  0xd7   :  { %3425 = vst [vmem:[#allocation61_spill] sm:$0xff] %v2397_v7  ;;  %3426 = vst [vmem:[#allocation62_spill] sm:$0xff] %v2401_v17  ;;  %v2425_v17 = vmul.f32 %v2045_v50, %v245_v37  ;;  %v2428_v7 = vmul.f32 %v2047_v53, %v245_v37  ;;  %v2451_v37 = vmul.f32 %v2045_v50, %v2053_v23 }
  0xd8   :  { %3427 = vst [vmem:[#allocation63_spill] sm:$0xff] %v2422_v12  ;;  %3430 = vst [vmem:[#allocation66_spill] sm:$0xff] %v2431_v15  ;;  %v2443_v12 = vmul.f32 %v2049_v54, %v240_v51  ;;  %v2455_v15 = vmul.f32 %v2047_v53, %v2053_v23  ;;  %v2464_v51 = vmul.f32 %v2043_v49, %v2055_v32  ;;  %968 = vperm.xlu1 %1675, %v1953_v63  }
  0xd9   :  { %3428 = vst [vmem:[#allocation64_spill] sm:$0xff] %v2425_v17  ;;  %3429 = vst [vmem:[#allocation65_spill] sm:$0xff] %v2428_v7  ;;  %v2447_v17 = vmul.f32 %v2043_v49, %v2053_v23  ;;  %v2459_v7 = vmul.f32 %v2049_v54, %v2053_v23  ;;  %v255_v23 = vpop.permute.xlu1 %254 }
  0xda   :  { %3431 = vst [vmem:[#allocation67_spill] sm:$0xff] %v2434_v5  ;;  %3432 = vst [vmem:[#allocation68_spill] sm:$0xff] %v2437_v38  ;;  %v2476_v38 = vmul.f32 %v2049_v54, %v2055_v32  ;;  %v2480_v5 = vmul.f32 %v2043_v49, %v255_v23 }
  0xdb   :  { %3433 = vst [vmem:[#allocation69_spill] sm:$0xff] %v2440_v60  ;;  %3434 = vst [vmem:[#allocation70_spill] sm:$0xff] %v2443_v12  ;;  %v2468_v12 = vmul.f32 %v2045_v50, %v2055_v32  ;;  %v2472_v60 = vmul.f32 %v2047_v53, %v2055_v32  ;;  %v2495_v32 = vmul.f32 %v2045_v50, %v250_v55 }
  0xdc   :  { %3435 = vst [vmem:[#allocation71_spill] sm:$0xff] %v2447_v17  ;;  %3436 = vst [vmem:[#allocation72_spill] sm:$0xff] %v2451_v37  ;;  %v2489_v37 = vmul.f32 %v2049_v54, %v255_v23  ;;  %v2492_v17 = vmul.f32 %v2043_v49, %v250_v55 }
  0xdd   :  { %3437 = vst [vmem:[#allocation73_spill] sm:$0xff] %v2455_v15  ;;  %3438 = vst [vmem:[#allocation74_spill] sm:$0xff] %v2459_v7  ;;  %v2483_v7 = vmul.f32 %v2045_v50, %v255_v23  ;;  %v2486_v15 = vmul.f32 %v2047_v53, %v255_v23  ;;  %v2509_v23 = vmul.f32 %v2045_v50, %v2099_v2 }
  0xde   :  { %3439 = vst [vmem:[#allocation75_spill] sm:$0xff] %v2480_v5  ;;  %3442 = vst [vmem:[#allocation78_spill] sm:$0xff] %v2489_v37  ;;  %v2501_v5 = vmul.f32 %v2049_v54, %v250_v55  ;;  %v2513_v37 = vmul.f32 %v2047_v53, %v2099_v2  ;;  %v2522_v55 = vmul.f32 %v2043_v49, %v2101_v29 }
  0xdf   :  { %3440 = vst [vmem:[#allocation76_spill] sm:$0xff] %v2483_v7  ;;  %3441 = vst [vmem:[#allocation77_spill] sm:$0xff] %v2486_v15  ;;  %v2505_v7 = vmul.f32 %v2043_v49, %v2099_v2  ;;  %v2517_v15 = vmul.f32 %v2049_v54, %v2099_v2  ;;  %v2538_v2 = vmul.f32 %v2043_v49, %v2177_v35 }
  0xe0   :  { %3443 = vst [vmem:[#allocation79_spill] sm:$0xff] %v2492_v17  ;;  %3444 = vst [vmem:[#allocation80_spill] sm:$0xff] %v2495_v32  ;;  %v2534_v32 = vmul.f32 %v2049_v54, %v2101_v29  ;;  %v2546_v17 = vmul.f32 %v2047_v53, %v2177_v35 }
  0xe1   :  { %3445 = vst [vmem:[#allocation81_spill] sm:$0xff] %v2498_v0  ;;  %3446 = vst [vmem:[#allocation82_spill] sm:$0xff] %v2501_v5  ;;  %v2526_v5 = vmul.f32 %v2045_v50, %v2101_v29  ;;  %v2530_v0 = vmul.f32 %v2047_v53, %v2101_v29 }
  0xe2   :  { %3447 = vst [vmem:[#allocation83_spill] sm:$0xff] %v2505_v7  ;;  %3448 = vst [vmem:[#allocation84_spill] sm:$0xff] %v2509_v23  ;;  %v425_v23 = vpop.permute.xlu0 %424 }
  0xe3   :  { %3449 = vst [vmem:[#allocation85_spill] sm:$0xff] %v2513_v37  ;;  %3450 = vst [vmem:[#allocation86_spill] sm:$0xff] %v2517_v15  ;;  %v2550_v15 = vmul.f32 %v2049_v54, %v2177_v35  ;;  %v429_v37 = vpop.permute.xlu1 %428  ;;  %v2566_v35 = vmul.f32 %v2047_v53, %v2241_v39 }
  0xe4   :  { %3451 = vst [vmem:[#allocation87_spill] sm:$0xff] %v2530_v0  ;;  %3452 = vst [vmem:[#allocation88_spill] sm:$0xff] %v2534_v32  ;;  %v591_v29 = vmul.f32 %v2057_v1, %v429_v37  ;;  %v592_v7 = vmul.f32 %v2059_v6, %v429_v37  ;;  %v594_v32 = vmul.f32 %v2063_v18, %v429_v37 }
  0xe5   :  { %3453 = vst [vmem:[#allocation89_spill] sm:$0xff] %v2538_v2  ;;  %3454 = vst [vmem:[#allocation90_spill] sm:$0xff] %v2542_v59  ;;  %v593_v2 = vmul.f32 %v2061_v8, %v429_v37  ;;  %v2558_v59 = vmul.f32 %v2043_v49, %v2241_v39  ;;  %v587_v37 = vmul.f32 %v2057_v1, %v425_v23 }
  0xe6   :  { %3455 = vst [vmem:[#allocation91_spill] sm:$0xff] %v2546_v17  ;;  %3456 = vst [vmem:[#allocation92_spill] sm:$0xff] %v2550_v15  ;;  %v2562_v17 = vmul.f32 %v2045_v50, %v2241_v39  ;;  %v2570_v15 = vmul.f32 %v2049_v54, %v2241_v39  ;;  %v588_v0 = vmul.f32 %v2059_v6, %v425_v23  ;;  %v437_v39 = vpop.permute.xlu0 %436 }
  0xe7   :  { %3457 = vst [vmem:[#allocation93_spill] sm:$0xff] %v2558_v59  ;;  %3459 = vst [vmem:[#allocation95_spill] sm:$0xff] %v2566_v35  ;;  %v589_v49 = vmul.f32 %v2061_v8, %v425_v23  ;;  %v590_v59 = vmul.f32 %v2063_v18, %v425_v23  ;;  %v2578_v50 = vadd.f32 %v591_v29, %v2129_v19  ;;  %v433_v63 = vpop.permute.xlu1 %432 }
  0xe8   :  { %3458 = vst [vmem:[#allocation94_spill] sm:$0xff] %v2562_v17  ;;  %3460 = vst [vmem:[#allocation96_spill] sm:$0xff] %v2570_v15  ;;  %v2581_v53 = vadd.f32 %v592_v7, %v2133_v42  ;;  %v2584_v35 = vadd.f32 %v593_v2, %v2137_v45  ;;  %v2587_v54 = vadd.f32 %v594_v32, %v2141_v46 }
  0xe9   :  { %v595_v15 = vmul.f32 %v2057_v1, %v433_v63  ;;  %v596_v17 = vmul.f32 %v2059_v6, %v433_v63  ;;  %v597_v23 = vmul.f32 %v2061_v8, %v433_v63  ;;  %v598_v19 = vmul.f32 %v2063_v18, %v433_v63 }
  0xea   :  { %3461 = vst [vmem:[#allocation97_spill] sm:$0xff] %v2584_v35  ;;  %3462 = vst [vmem:[#allocation98_spill] sm:$0xff] %v2587_v54  ;;  %v599_v29 = vmul.f32 %v2057_v1, %v437_v39  ;;  %v600_v42 = vmul.f32 %v2059_v6, %v437_v39  ;;  %v601_v45 = vmul.f32 %v2061_v8, %v437_v39 }
  0xeb   :  { %v602_v7 = vmul.f32 %v2063_v18, %v437_v39  ;;  %v2598_v46 = vadd.f32 %v595_v15, %v2067_v27  ;;  %v2601_v32 = vadd.f32 %v596_v17, %v2071_v36  ;;  %v2604_v2 = vadd.f32 %v597_v23, %v2075_v21  ;;  %v441_v36 = vpop.permute.xlu1 %440  ;;  %v445_v17 = vpop.permute.xlu0 %444 }
  0xec   :  { %v2607_v54 = vadd.f32 %v598_v19, %v2079_v22  ;;  %v2610_v63 = vadd.f32 %v599_v29, %v2113_v3  ;;  %v2613_v35 = vadd.f32 %v600_v42, %v2117_v31  ;;  %v2616_v39 = vadd.f32 %v601_v45, %v2121_v40 }
  0xed   :  { %v2619_v27 = vadd.f32 %v602_v7, %v2125_v41  ;;  %v603_v21 = vmul.f32 %v2057_v1, %v441_v36  ;;  %v604_v15 = vmul.f32 %v2059_v6, %v441_v36  ;;  %v605_v22 = vmul.f32 %v2061_v8, %v441_v36 }
  0xee   :  { %v606_v3 = vmul.f32 %v2063_v18, %v441_v36  ;;  %v607_v23 = vmul.f32 %v2057_v1, %v445_v17  ;;  %v608_v31 = vmul.f32 %v2059_v6, %v445_v17  ;;  %v609_v40 = vmul.f32 %v2061_v8, %v445_v17 }
  0xef   :  { %v610_v19 = vmul.f32 %v2063_v18, %v445_v17  ;;  %v2630_v41 = vadd.f32 %v587_v37, %v2083_v11  ;;  %v2633_v29 = vadd.f32 %v588_v0, %v2087_v20  ;;  %v2636_v42 = vadd.f32 %v589_v49, %v2091_v25  ;;  %v449_v20 = vpop.permute.xlu1 %448  ;;  %v453_v0 = vpop.permute.xlu0 %452  ;;  %v3466_v37 = vld [vmem:[#allocation12_spill] sm:$0xff] }
  0xf0   :  { %v2639_v45 = vadd.f32 %v590_v59, %v2095_v26  ;;  %v2642_v7 = vadd.f32 %v607_v23, %v2145_v9  ;;  %v2645_v36 = vadd.f32 %v608_v31, %v2149_v57  ;;  %v2648_v17 = vadd.f32 %v609_v40, %v2153_v58  ;;  %v3467_v59 = vld [vmem:[#allocation13_spill] sm:$0xff] }
  0xf1   :  { %v2651_v11 = vadd.f32 %v610_v19, %v2157_v61  ;;  %v2654_v25 = vadd.f32 %v603_v21, %v2162_v10  ;;  %v2657_v26 = vadd.f32 %v604_v15, %v3466_v37  ;;  %v2660_v9 = vadd.f32 %v605_v22, %v3467_v59 }
  0xf2   :  { %3463 = vst [vmem:[#allocation99_spill] sm:$0xff] %v2645_v36  ;;  %3464 = vst [vmem:[#allocation100_spill] sm:$0xff] %v2648_v17  ;;  %v2663_v57 = vadd.f32 %v606_v3, %v2174_v34  ;;  %v615_v58 = vmul.f32 %v2057_v1, %v453_v0  ;;  %v616_v49 = vmul.f32 %v2059_v6, %v453_v0  ;;  %v3469_v3 = vld [vmem:[#allocation18_spill] sm:$0xff]  ;;  %v3481_v36 = vld [vmem:[#allocation25_spill] sm:$0xff] }
  0xf3   :  { %3465 = vst [vmem:[#allocation101_spill] sm:$0xff] %v2651_v11  ;;  %v617_v61 = vmul.f32 %v2061_v8, %v453_v0  ;;  %v618_v23 = vmul.f32 %v2063_v18, %v453_v0  ;;  %v2670_v10 = vmul.f32 %v2057_v1, %v449_v20  ;;  %v2673_v21 = vmul.f32 %v2059_v6, %v449_v20  ;;  %v457_v0 = vpop.permute.xlu1 %456  ;;  %v461_v37 = vpop.permute.xlu0 %460 }
  0xf4   :  { %v2676_v15 = vmul.f32 %v2061_v8, %v449_v20  ;;  %v2679_v34 = vmul.f32 %v2063_v18, %v449_v20  ;;  %v2682_v22 = vadd.f32 %v615_v58, %v2193_v14  ;;  %v2685_v31 = vadd.f32 %v616_v49, %v3469_v3 }
  0xf5   :  { %v2688_v40 = vadd.f32 %v617_v61, %v2201_v33  ;;  %v2691_v19 = vadd.f32 %v618_v23, %v2205_v30  ;;  %v619_v59 = vmul.f32 %v2057_v1, %v457_v0  ;;  %v620_v11 = vmul.f32 %v2059_v6, %v457_v0 }
  0xf6   :  { %3468 = vst [vmem:[#allocation12_spill] sm:$0xff] %v2682_v22  ;;  %3470 = vst [vmem:[#allocation13_spill] sm:$0xff] %v2685_v31  ;;  %v621_v20 = vmul.f32 %v2061_v8, %v457_v0  ;;  %v622_v14 = vmul.f32 %v2063_v18, %v457_v0  ;;  %v623_v58 = vmul.f32 %v2057_v1, %v461_v37  ;;  %v3477_v0 = vld [vmem:[#allocation23_spill] sm:$0xff]  ;;  %v3479_v22 = vld [vmem:[#allocation24_spill] sm:$0xff] }
  0xf7   :  { %3471 = vst [vmem:[#allocation18_spill] sm:$0xff] %v2688_v40  ;;  %3472 = vst [vmem:[#allocation102_spill] sm:$0xff] %v2691_v19  ;;  %v624_v49 = vmul.f32 %v2059_v6, %v461_v37  ;;  %v625_v33 = vmul.f32 %v2061_v8, %v461_v37  ;;  %v626_v61 = vmul.f32 %v2063_v18, %v461_v37  ;;  %v3475_v19 = vld [vmem:[#allocation31_spill] sm:$0xff] }
  0xf8   :  { %v2702_v30 = vadd.f32 %v619_v59, %v2257_v4  ;;  %v2705_v23 = vadd.f32 %v620_v11, %v2261_v48  ;;  %v2708_v3 = vadd.f32 %v621_v20, %v2265_v44  ;;  %v2711_v40 = vadd.f32 %v622_v14, %v3475_v19  ;;  %v3483_v4 = vld [vmem:[#allocation26_spill] sm:$0xff]  ;;  %v465_v48 = vpop.permute.xlu1 %464  ;;  %v469_v11 = vpop.permute.xlu0 %468 }
  0xf9   :  { %v2714_v31 = vadd.f32 %v623_v58, %v3477_v0  ;;  %v2717_v17 = vadd.f32 %v624_v49, %v3479_v22  ;;  %v2720_v37 = vadd.f32 %v625_v33, %v3481_v36  ;;  %v2723_v59 = vadd.f32 %v626_v61, %v3483_v4  ;;  %v3485_v33 = vld [vmem:[#allocation36_spill] sm:$0xff]  ;;  %v3486_v0 = vld [vmem:[#allocation37_spill] sm:$0xff] }
  0xfa   :  { %3473 = vst [vmem:[#allocation103_spill] sm:$0xff] %v2705_v23  ;;  %3474 = vst [vmem:[#allocation104_spill] sm:$0xff] %v2708_v3  ;;  %v627_v44 = vmul.f32 %v2057_v1, %v465_v48  ;;  %v628_v20 = vmul.f32 %v2059_v6, %v465_v48  ;;  %v629_v19 = vmul.f32 %v2061_v8, %v465_v48  ;;  %v3492_v23 = vld [vmem:[#allocation34_spill] sm:$0xff] }
  0xfb   :  { %3476 = vst [vmem:[#allocation31_spill] sm:$0xff] %v2711_v40  ;;  %3478 = vst [vmem:[#allocation23_spill] sm:$0xff] %v2714_v31  ;;  %v630_v14 = vmul.f32 %v2063_v18, %v465_v48  ;;  %v631_v58 = vmul.f32 %v2057_v1, %v469_v11  ;;  %v632_v22 = vmul.f32 %v2059_v6, %v469_v11  ;;  %v3488_v48 = vld [vmem:[#allocation32_spill] sm:$0xff]  ;;  %v3490_v40 = vld [vmem:[#allocation33_spill] sm:$0xff] }
  0xfc   :  { %3480 = vst [vmem:[#allocation24_spill] sm:$0xff] %v2717_v17  ;;  %3482 = vst [vmem:[#allocation25_spill] sm:$0xff] %v2720_v37  ;;  %v633_v36 = vmul.f32 %v2061_v8, %v469_v11  ;;  %v634_v49 = vmul.f32 %v2063_v18, %v469_v11  ;;  %v2734_v61 = vadd.f32 %v627_v44, %v3485_v33  ;;  %v3494_v44 = vld [vmem:[#allocation35_spill] sm:$0xff] }
  0xfd   :  { %3484 = vst [vmem:[#allocation26_spill] sm:$0xff] %v2723_v59  ;;  %v2737_v4 = vadd.f32 %v628_v20, %v3486_v0  ;;  %v3487_v59 = vld [vmem:[#allocation38_spill] sm:$0xff]  ;;  %v2743_v17 = vadd.f32 %v630_v14, %v2302_v13  ;;  %v2746_v31 = vadd.f32 %v631_v58, %v3488_v48  ;;  %v2749_v3 = vadd.f32 %v632_v22, %v3490_v40  ;;  %v473_v20 = vpop.permute.xlu1 %472  ;;  %v477_v0 = vpop.permute.xlu0 %476 }
  0xfe   :  { %v2740_v37 = vadd.f32 %v629_v19, %v3487_v59  ;;  %v2752_v11 = vadd.f32 %v633_v36, %v3492_v23  ;;  %v2755_v33 = vadd.f32 %v634_v49, %v3494_v44  ;;  %v635_v59 = vmul.f32 %v2057_v1, %v473_v20 }
  0xff   :  { %3489 = vst [vmem:[#allocation36_spill] sm:$0xff] %v2746_v31  ;;  %3491 = vst [vmem:[#allocation37_spill] sm:$0xff] %v2749_v3  ;;  %v636_v19 = vmul.f32 %v2059_v6, %v473_v20  ;;  %v637_v13 = vmul.f32 %v2061_v8, %v473_v20  ;;  %v638_v14 = vmul.f32 %v2063_v18, %v473_v20  ;;  %v3496_v20 = vld [vmem:[#allocation47_spill] sm:$0xff]  ;;  %v3500_v31 = vld [vmem:[#allocation49_spill] sm:$0xff] }
 0x100   :  { %3493 = vst [vmem:[#allocation38_spill] sm:$0xff] %v2752_v11  ;;  %3495 = vst [vmem:[#allocation32_spill] sm:$0xff] %v2755_v33  ;;  %v639_v58 = vmul.f32 %v2057_v1, %v477_v0  ;;  %v640_v40 = vmul.f32 %v2059_v6, %v477_v0  ;;  %v641_v23 = vmul.f32 %v2061_v8, %v477_v0  ;;  %v3498_v11 = vld [vmem:[#allocation48_spill] sm:$0xff] }
 0x101   :  { %v642_v22 = vmul.f32 %v2063_v18, %v477_v0  ;;  %v2766_v36 = vadd.f32 %v635_v59, %v2348_v43  ;;  %v2769_v49 = vadd.f32 %v636_v19, %v2352_v62  ;;  %v2772_v48 = vadd.f32 %v637_v13, %v2356_v52  ;;  %v3502_v43 = vld [vmem:[#allocation50_spill] sm:$0xff]  ;;  %v481_v62 = vpop.permute.xlu1 %480  ;;  %v485_v19 = vpop.permute.xlu0 %484 }
 0x102   :  { %v2775_v44 = vadd.f32 %v638_v14, %v2360_v16  ;;  %v2778_v33 = vadd.f32 %v639_v58, %v3496_v20  ;;  %v2781_v3 = vadd.f32 %v640_v40, %v3498_v11  ;;  %v2784_v0 = vadd.f32 %v641_v23, %v3500_v31 }
 0x103   :  { %v2787_v59 = vadd.f32 %v642_v22, %v3502_v43  ;;  %v643_v52 = vmul.f32 %v2057_v1, %v481_v62  ;;  %v644_v13 = vmul.f32 %v2059_v6, %v481_v62  ;;  %v645_v16 = vmul.f32 %v2061_v8, %v481_v62 }
 0x104   :  { %3497 = vst [vmem:[#allocation33_spill] sm:$0xff] %v2778_v33  ;;  %3499 = vst [vmem:[#allocation34_spill] sm:$0xff] %v2781_v3  ;;  %v646_v14 = vmul.f32 %v2063_v18, %v481_v62  ;;  %v647_v58 = vmul.f32 %v2057_v1, %v485_v19  ;;  %v648_v11 = vmul.f32 %v2059_v6, %v485_v19  ;;  %v3508_v62 = vld [vmem:[#allocation59_spill] sm:$0xff]  ;;  %v3512_v33 = vld [vmem:[#allocation61_spill] sm:$0xff] }
 0x105   :  { %3501 = vst [vmem:[#allocation35_spill] sm:$0xff] %v2784_v0  ;;  %3503 = vst [vmem:[#allocation47_spill] sm:$0xff] %v2787_v59  ;;  %v649_v31 = vmul.f32 %v2061_v8, %v485_v19  ;;  %v650_v40 = vmul.f32 %v2063_v18, %v485_v19  ;;  %v2798_v23 = vadd.f32 %v643_v52, %v2406_v47  ;;  %v3510_v0 = vld [vmem:[#allocation60_spill] sm:$0xff]  ;;  %v3514_v47 = vld [vmem:[#allocation62_spill] sm:$0xff] }
 0x106   :  { %v2801_v22 = vadd.f32 %v644_v13, %v2410_v28  ;;  %v2804_v20 = vadd.f32 %v645_v16, %v2414_v56  ;;  %v2807_v43 = vadd.f32 %v646_v14, %v2418_v24  ;;  %v2810_v59 = vadd.f32 %v647_v58, %v3508_v62  ;;  %v489_v28 = vpop.permute.xlu1 %488  ;;  %v493_v13 = vpop.permute.xlu0 %492 }
 0x107   :  { %3504 = vst [vmem:[#allocation48_spill] sm:$0xff] %v2798_v23  ;;  %v2813_v3 = vadd.f32 %v648_v11, %v3510_v0  ;;  %v2816_v19 = vadd.f32 %v649_v31, %v3512_v33  ;;  %v2819_v52 = vadd.f32 %v650_v40, %v3514_v47  ;;  %v651_v56 = vmul.f32 %v2057_v1, %v489_v28 }
 0x108   :  { %3505 = vst [vmem:[#allocation49_spill] sm:$0xff] %v2801_v22  ;;  %3506 = vst [vmem:[#allocation50_spill] sm:$0xff] %v2804_v20  ;;  %v652_v16 = vmul.f32 %v2059_v6, %v489_v28  ;;  %v653_v24 = vmul.f32 %v2061_v8, %v489_v28  ;;  %v654_v14 = vmul.f32 %v2063_v18, %v489_v28  ;;  %v3520_v28 = vld [vmem:[#allocation71_spill] sm:$0xff]  ;;  %v3647_v20 = vld [vmem:[#allocation98_spill] sm:$0xff] }
 0x109   :  { %3507 = vst [vmem:[#allocation105_spill] sm:$0xff] %v2807_v43  ;;  %3509 = vst [vmem:[#allocation59_spill] sm:$0xff] %v2810_v59  ;;  %v655_v58 = vmul.f32 %v2057_v1, %v493_v13  ;;  %v656_v0 = vmul.f32 %v2059_v6, %v493_v13  ;;  %v657_v33 = vmul.f32 %v2061_v8, %v493_v13  ;;  %v3524_v59 = vld [vmem:[#allocation73_spill] sm:$0xff] }
 0x10a   :  { %3511 = vst [vmem:[#allocation60_spill] sm:$0xff] %v2813_v3  ;;  %3513 = vst [vmem:[#allocation61_spill] sm:$0xff] %v2816_v19  ;;  %v658_v11 = vmul.f32 %v2063_v18, %v493_v13  ;;  %v2830_v31 = vadd.f32 %v651_v56, %v2464_v51  ;;  %v2833_v40 = vadd.f32 %v652_v16, %v2468_v12  ;;  %v3522_v19 = vld [vmem:[#allocation72_spill] sm:$0xff]  ;;  %v3526_v51 = vld [vmem:[#allocation74_spill] sm:$0xff]  ;;  %v497_v12 = vpop.permute.xlu1 %496  ;;  %v501_v16 = vpop.permute.xlu0 %500 }
 0x10b   :  { %3515 = vst [vmem:[#allocation62_spill] sm:$0xff] %v2819_v52  ;;  %v2836_v62 = vadd.f32 %v653_v24, %v2472_v60  ;;  %v2839_v47 = vadd.f32 %v654_v14, %v2476_v38  ;;  %v2842_v52 = vadd.f32 %v655_v58, %v3520_v28  ;;  %v2845_v3 = vadd.f32 %v656_v0, %v3522_v19  ;;  %v3530_v28 = vld [vmem:[#allocation87_spill] sm:$0xff] }
 0x10c   :  { %3516 = vst [vmem:[#allocation106_spill] sm:$0xff] %v2830_v31  ;;  %3517 = vst [vmem:[#allocation107_spill] sm:$0xff] %v2833_v40  ;;  %v2848_v13 = vadd.f32 %v657_v33, %v3524_v59  ;;  %v2851_v56 = vadd.f32 %v658_v11, %v3526_v51  ;;  %v659_v60 = vmul.f32 %v2057_v1, %v497_v12  ;;  %v3646_v31 = vld [vmem:[#allocation97_spill] sm:$0xff] }
 0x10d   :  { %3518 = vst [vmem:[#allocation108_spill] sm:$0xff] %v2836_v62  ;;  %3519 = vst [vmem:[#allocation109_spill] sm:$0xff] %v2839_v47  ;;  %v660_v24 = vmul.f32 %v2059_v6, %v497_v12  ;;  %v661_v38 = vmul.f32 %v2061_v8, %v497_v12  ;;  %v662_v14 = vmul.f32 %v2063_v18, %v497_v12  ;;  %v3534_v12 = vld [vmem:[#allocation83_spill] sm:$0xff]  ;;  %v3538_v62 = vld [vmem:[#allocation85_spill] sm:$0xff] }
 0x10e   :  { %3521 = vst [vmem:[#allocation71_spill] sm:$0xff] %v2842_v52  ;;  %3523 = vst [vmem:[#allocation72_spill] sm:$0xff] %v2845_v3  ;;  %v663_v58 = vmul.f32 %v2057_v1, %v501_v16  ;;  %v664_v19 = vmul.f32 %v2059_v6, %v501_v16  ;;  %v665_v59 = vmul.f32 %v2061_v8, %v501_v16  ;;  %v3536_v52 = vld [vmem:[#allocation84_spill] sm:$0xff] }
 0x10f   :  { %3525 = vst [vmem:[#allocation73_spill] sm:$0xff] %v2848_v13  ;;  %3527 = vst [vmem:[#allocation74_spill] sm:$0xff] %v2851_v56  ;;  %v666_v0 = vmul.f32 %v2063_v18, %v501_v16  ;;  %v2862_v33 = vadd.f32 %v659_v60, %v2522_v55  ;;  %v2865_v11 = vadd.f32 %v660_v24, %v2526_v5  ;;  %v3532_v56 = vld [vmem:[#allocation88_spill] sm:$0xff]  ;;  %v3540_v55 = vld [vmem:[#allocation86_spill] sm:$0xff]  ;;  %v505_v5 = vpop.permute.xlu1 %504  ;;  %v509_v24 = vpop.permute.xlu0 %508 }
 0x110   :  { %v2868_v51 = vadd.f32 %v661_v38, %v3530_v28  ;;  %v2871_v13 = vadd.f32 %v662_v14, %v3532_v56  ;;  %v2874_v3 = vadd.f32 %v663_v58, %v3534_v12  ;;  %v2877_v47 = vadd.f32 %v664_v19, %v3536_v52  ;;  %v3544_v12 = vld [vmem:[#allocation90_spill] sm:$0xff] }
 0x111   :  { %3528 = vst [vmem:[#allocation110_spill] sm:$0xff] %v2862_v33  ;;  %3529 = vst [vmem:[#allocation111_spill] sm:$0xff] %v2865_v11  ;;  %v2880_v16 = vadd.f32 %v665_v59, %v3538_v62  ;;  %v2883_v60 = vadd.f32 %v666_v0, %v3540_v55  ;;  %v667_v38 = vmul.f32 %v2057_v1, %v505_v5  ;;  %v3542_v59 = vld [vmem:[#allocation89_spill] sm:$0xff]  ;;  %v3554_v33 = vld [vmem:[#allocation16_spill] sm:$0xff] }
 0x112   :  { %3531 = vst [vmem:[#allocation87_spill] sm:$0xff] %v2868_v51  ;;  %3533 = vst [vmem:[#allocation88_spill] sm:$0xff] %v2871_v13  ;;  %v668_v28 = vmul.f32 %v2059_v6, %v505_v5  ;;  %v669_v56 = vmul.f32 %v2061_v8, %v505_v5  ;;  %v670_v14 = vmul.f32 %v2063_v18, %v505_v5  ;;  %v3550_v5 = vld [vmem:[#allocation14_spill] sm:$0xff]  ;;  %v3552_v51 = vld [vmem:[#allocation15_spill] sm:$0xff] }
 0x113   :  { %3535 = vst [vmem:[#allocation83_spill] sm:$0xff] %v2874_v3  ;;  %3537 = vst [vmem:[#allocation84_spill] sm:$0xff] %v2877_v47  ;;  %v671_v58 = vmul.f32 %v2057_v1, %v509_v24  ;;  %v672_v52 = vmul.f32 %v2059_v6, %v509_v24  ;;  %v673_v62 = vmul.f32 %v2061_v8, %v509_v24  ;;  %v3548_v47 = vld [vmem:[#allocation92_spill] sm:$0xff] }
 0x114   :  { %3539 = vst [vmem:[#allocation85_spill] sm:$0xff] %v2880_v16  ;;  %3541 = vst [vmem:[#allocation86_spill] sm:$0xff] %v2883_v60  ;;  %v674_v19 = vmul.f32 %v2063_v18, %v509_v24  ;;  %v2894_v0 = vadd.f32 %v667_v38, %v3542_v59  ;;  %v2897_v55 = vadd.f32 %v668_v28, %v3544_v12  ;;  %v3546_v60 = vld [vmem:[#allocation91_spill] sm:$0xff]  ;;  %v3556_v38 = vld [vmem:[#allocation17_spill] sm:$0xff]  ;;  %v513_v28 = vpop.permute.xlu1 %512  ;;  %v517_v12 = vpop.permute.xlu0 %516 }
 0x115   :  { %v2900_v16 = vadd.f32 %v669_v56, %v3546_v60  ;;  %v2903_v3 = vadd.f32 %v670_v14, %v3548_v47  ;;  %v2906_v13 = vadd.f32 %v671_v58, %v3550_v5  ;;  %v2909_v11 = vadd.f32 %v672_v52, %v3552_v51  ;;  %v3560_v5 = vld [vmem:[#allocation94_spill] sm:$0xff] }
 0x116   :  { %3543 = vst [vmem:[#allocation89_spill] sm:$0xff] %v2894_v0  ;;  %3545 = vst [vmem:[#allocation90_spill] sm:$0xff] %v2897_v55  ;;  %v2912_v24 = vadd.f32 %v673_v62, %v3554_v33  ;;  %v2915_v59 = vadd.f32 %v674_v19, %v3556_v38  ;;  %v675_v60 = vmul.f32 %v2057_v1, %v513_v28  ;;  %v3558_v62 = vld [vmem:[#allocation93_spill] sm:$0xff] }
 0x117   :  { %3547 = vst [vmem:[#allocation91_spill] sm:$0xff] %v2900_v16  ;;  %3549 = vst [vmem:[#allocation92_spill] sm:$0xff] %v2903_v3  ;;  %v676_v56 = vmul.f32 %v2059_v6, %v513_v28  ;;  %v677_v47 = vmul.f32 %v2061_v8, %v513_v28  ;;  %v678_v14 = vmul.f32 %v2063_v18, %v513_v28  ;;  %v3566_v28 = vld [vmem:[#allocation27_spill] sm:$0xff]  ;;  %v3568_v16 = vld [vmem:[#allocation28_spill] sm:$0xff] }
 0x118   :  { %3551 = vst [vmem:[#allocation14_spill] sm:$0xff] %v2906_v13  ;;  %3553 = vst [vmem:[#allocation15_spill] sm:$0xff] %v2909_v11  ;;  %v679_v58 = vmul.f32 %v2057_v1, %v517_v12  ;;  %v680_v51 = vmul.f32 %v2059_v6, %v517_v12  ;;  %v681_v33 = vmul.f32 %v2061_v8, %v517_v12  ;;  %v3564_v11 = vld [vmem:[#allocation96_spill] sm:$0xff]  ;;  %v3570_v0 = vld [vmem:[#allocation29_spill] sm:$0xff] }
 0x119   :  { %3555 = vst [vmem:[#allocation16_spill] sm:$0xff] %v2912_v24  ;;  %3557 = vst [vmem:[#allocation17_spill] sm:$0xff] %v2915_v59  ;;  %v682_v52 = vmul.f32 %v2063_v18, %v517_v12  ;;  %v2926_v19 = vadd.f32 %v675_v60, %v3558_v62  ;;  %v2929_v38 = vadd.f32 %v676_v56, %v3560_v5  ;;  %v3562_v59 = vld [vmem:[#allocation95_spill] sm:$0xff]  ;;  %v3572_v60 = vld [vmem:[#allocation30_spill] sm:$0xff]  ;;  %v521_v56 = vpop.permute.xlu1 %520  ;;  %v525_v5 = vpop.permute.xlu0 %524 }
 0x11a   :  { %v2932_v24 = vadd.f32 %v677_v47, %v3562_v59  ;;  %v2935_v13 = vadd.f32 %v678_v14, %v3564_v11  ;;  %v2938_v3 = vadd.f32 %v679_v58, %v3566_v28  ;;  %v2941_v55 = vadd.f32 %v680_v51, %v3568_v16  ;;  %v3576_v28 = vld [vmem:[#allocation44_spill] sm:$0xff] }
 0x11b   :  { %3559 = vst [vmem:[#allocation93_spill] sm:$0xff] %v2926_v19  ;;  %3561 = vst [vmem:[#allocation94_spill] sm:$0xff] %v2929_v38  ;;  %v2944_v12 = vadd.f32 %v681_v33, %v3570_v0  ;;  %v2947_v62 = vadd.f32 %v682_v52, %v3572_v60  ;;  %v683_v59 = vmul.f32 %v2057_v1, %v521_v56  ;;  %v3574_v33 = vld [vmem:[#allocation43_spill] sm:$0xff]  ;;  %v3586_v19 = vld [vmem:[#allocation41_spill] sm:$0xff] }
 0x11c   :  { %3563 = vst [vmem:[#allocation95_spill] sm:$0xff] %v2932_v24  ;;  %3565 = vst [vmem:[#allocation96_spill] sm:$0xff] %v2935_v13  ;;  %v684_v47 = vmul.f32 %v2059_v6, %v521_v56  ;;  %v685_v11 = vmul.f32 %v2061_v8, %v521_v56  ;;  %v686_v14 = vmul.f32 %v2063_v18, %v521_v56  ;;  %v3582_v56 = vld [vmem:[#allocation39_spill] sm:$0xff]  ;;  %v3584_v24 = vld [vmem:[#allocation40_spill] sm:$0xff] }
 0x11d   :  { %3567 = vst [vmem:[#allocation27_spill] sm:$0xff] %v2938_v3  ;;  %3569 = vst [vmem:[#allocation28_spill] sm:$0xff] %v2941_v55  ;;  %v687_v58 = vmul.f32 %v2057_v1, %v525_v5  ;;  %v688_v16 = vmul.f32 %v2059_v6, %v525_v5  ;;  %v689_v0 = vmul.f32 %v2061_v8, %v525_v5  ;;  %v3580_v55 = vld [vmem:[#allocation46_spill] sm:$0xff] }
 0x11e   :  { %3571 = vst [vmem:[#allocation29_spill] sm:$0xff] %v2944_v12  ;;  %3573 = vst [vmem:[#allocation30_spill] sm:$0xff] %v2947_v62  ;;  %v690_v51 = vmul.f32 %v2063_v18, %v525_v5  ;;  %v2958_v52 = vadd.f32 %v683_v59, %v3574_v33  ;;  %v2961_v60 = vadd.f32 %v684_v47, %v3576_v28  ;;  %v3578_v62 = vld [vmem:[#allocation45_spill] sm:$0xff]  ;;  %v3588_v59 = vld [vmem:[#allocation42_spill] sm:$0xff]  ;;  %v529_v47 = vpop.permute.xlu1 %528  ;;  %v533_v28 = vpop.permute.xlu0 %532 }
 0x11f   :  { %v2964_v12 = vadd.f32 %v685_v11, %v3578_v62  ;;  %v2967_v3 = vadd.f32 %v686_v14, %v3580_v55  ;;  %v2970_v13 = vadd.f32 %v687_v58, %v3582_v56  ;;  %v2973_v38 = vadd.f32 %v688_v16, %v3584_v24  ;;  %v3592_v56 = vld [vmem:[#allocation56_spill] sm:$0xff] }
 0x120   :  { %3575 = vst [vmem:[#allocation43_spill] sm:$0xff] %v2958_v52  ;;  %3577 = vst [vmem:[#allocation44_spill] sm:$0xff] %v2961_v60  ;;  %v2976_v5 = vadd.f32 %v689_v0, %v3586_v19  ;;  %v2979_v33 = vadd.f32 %v690_v51, %v3588_v59  ;;  %v691_v62 = vmul.f32 %v2057_v1, %v529_v47  ;;  %v3590_v0 = vld [vmem:[#allocation55_spill] sm:$0xff]  ;;  %v3602_v52 = vld [vmem:[#allocation53_spill] sm:$0xff] }
 0x121   :  { %3579 = vst [vmem:[#allocation45_spill] sm:$0xff] %v2964_v12  ;;  %3581 = vst [vmem:[#allocation46_spill] sm:$0xff] %v2967_v3  ;;  %v692_v11 = vmul.f32 %v2059_v6, %v529_v47  ;;  %v693_v55 = vmul.f32 %v2061_v8, %v529_v47  ;;  %v694_v14 = vmul.f32 %v2063_v18, %v529_v47  ;;  %v3598_v47 = vld [vmem:[#allocation51_spill] sm:$0xff]  ;;  %v3600_v12 = vld [vmem:[#allocation52_spill] sm:$0xff] }
 0x122   :  { %3583 = vst [vmem:[#allocation39_spill] sm:$0xff] %v2970_v13  ;;  %3585 = vst [vmem:[#allocation40_spill] sm:$0xff] %v2973_v38  ;;  %v695_v58 = vmul.f32 %v2057_v1, %v533_v28  ;;  %v696_v24 = vmul.f32 %v2059_v6, %v533_v28  ;;  %v697_v19 = vmul.f32 %v2061_v8, %v533_v28  ;;  %v3596_v38 = vld [vmem:[#allocation58_spill] sm:$0xff] }
 0x123   :  { %3587 = vst [vmem:[#allocation41_spill] sm:$0xff] %v2976_v5  ;;  %3589 = vst [vmem:[#allocation42_spill] sm:$0xff] %v2979_v33  ;;  %v698_v16 = vmul.f32 %v2063_v18, %v533_v28  ;;  %v2990_v51 = vadd.f32 %v691_v62, %v3590_v0  ;;  %v2993_v59 = vadd.f32 %v692_v11, %v3592_v56  ;;  %v3594_v33 = vld [vmem:[#allocation57_spill] sm:$0xff]  ;;  %v3604_v62 = vld [vmem:[#allocation54_spill] sm:$0xff]  ;;  %v537_v11 = vpop.permute.xlu1 %536  ;;  %v541_v56 = vpop.permute.xlu0 %540 }
 0x124   :  { %v2996_v5 = vadd.f32 %v693_v55, %v3594_v33  ;;  %v2999_v13 = vadd.f32 %v694_v14, %v3596_v38  ;;  %v3002_v3 = vadd.f32 %v695_v58, %v3598_v47  ;;  %v3005_v60 = vadd.f32 %v696_v24, %v3600_v12  ;;  %v3608_v47 = vld [vmem:[#allocation68_spill] sm:$0xff] }
 0x125   :  { %3591 = vst [vmem:[#allocation55_spill] sm:$0xff] %v2990_v51  ;;  %3593 = vst [vmem:[#allocation56_spill] sm:$0xff] %v2993_v59  ;;  %v3008_v28 = vadd.f32 %v697_v19, %v3602_v52  ;;  %v3011_v0 = vadd.f32 %v698_v16, %v3604_v62  ;;  %v699_v33 = vmul.f32 %v2057_v1, %v537_v11  ;;  %v3606_v19 = vld [vmem:[#allocation67_spill] sm:$0xff]  ;;  %v3618_v51 = vld [vmem:[#allocation65_spill] sm:$0xff] }
 0x126   :  { %3595 = vst [vmem:[#allocation57_spill] sm:$0xff] %v2996_v5  ;;  %3597 = vst [vmem:[#allocation58_spill] sm:$0xff] %v2999_v13  ;;  %v700_v55 = vmul.f32 %v2059_v6, %v537_v11  ;;  %v701_v38 = vmul.f32 %v2061_v8, %v537_v11  ;;  %v702_v14 = vmul.f32 %v2063_v18, %v537_v11  ;;  %v3614_v11 = vld [vmem:[#allocation63_spill] sm:$0xff]  ;;  %v3616_v5 = vld [vmem:[#allocation64_spill] sm:$0xff] }
 0x127   :  { %3599 = vst [vmem:[#allocation51_spill] sm:$0xff] %v3002_v3  ;;  %3601 = vst [vmem:[#allocation52_spill] sm:$0xff] %v3005_v60  ;;  %v703_v58 = vmul.f32 %v2057_v1, %v541_v56  ;;  %v704_v12 = vmul.f32 %v2059_v6, %v541_v56  ;;  %v705_v52 = vmul.f32 %v2061_v8, %v541_v56  ;;  %v3612_v60 = vld [vmem:[#allocation70_spill] sm:$0xff] }
 0x128   :  { %3603 = vst [vmem:[#allocation53_spill] sm:$0xff] %v3008_v28  ;;  %3605 = vst [vmem:[#allocation54_spill] sm:$0xff] %v3011_v0  ;;  %v706_v24 = vmul.f32 %v2063_v18, %v541_v56  ;;  %v3022_v16 = vadd.f32 %v699_v33, %v3606_v19  ;;  %v3025_v62 = vadd.f32 %v700_v55, %v3608_v47  ;;  %v3610_v0 = vld [vmem:[#allocation69_spill] sm:$0xff]  ;;  %v3620_v33 = vld [vmem:[#allocation66_spill] sm:$0xff]  ;;  %v545_v55 = vpop.permute.xlu1 %544  ;;  %v549_v47 = vpop.permute.xlu0 %548 }
 0x129   :  { %v3028_v28 = vadd.f32 %v701_v38, %v3610_v0  ;;  %v3031_v3 = vadd.f32 %v702_v14, %v3612_v60  ;;  %v3034_v13 = vadd.f32 %v703_v58, %v3614_v11  ;;  %v3037_v59 = vadd.f32 %v704_v12, %v3616_v5  ;;  %v3624_v11 = vld [vmem:[#allocation80_spill] sm:$0xff] }
 0x12a   :  { %3607 = vst [vmem:[#allocation67_spill] sm:$0xff] %v3022_v16  ;;  %3609 = vst [vmem:[#allocation68_spill] sm:$0xff] %v3025_v62  ;;  %v3040_v56 = vadd.f32 %v705_v52, %v3618_v51  ;;  %v3043_v19 = vadd.f32 %v706_v24, %v3620_v33  ;;  %v707_v0 = vmul.f32 %v2057_v1, %v545_v55  ;;  %v3622_v52 = vld [vmem:[#allocation79_spill] sm:$0xff] }
 0x12b   :  { %3611 = vst [vmem:[#allocation69_spill] sm:$0xff] %v3028_v28  ;;  %3613 = vst [vmem:[#allocation70_spill] sm:$0xff] %v3031_v3  ;;  %v708_v38 = vmul.f32 %v2059_v6, %v545_v55  ;;  %v709_v60 = vmul.f32 %v2061_v8, %v545_v55  ;;  %v710_v14 = vmul.f32 %v2063_v18, %v545_v55  ;;  %v3630_v55 = vld [vmem:[#allocation75_spill] sm:$0xff]  ;;  %v1269_v28 = vld [vmem:[#allocation2 + $0x30] sm:$0xff] }
 0x12c   :  { %3615 = vst [vmem:[#allocation63_spill] sm:$0xff] %v3034_v13  ;;  %3617 = vst [vmem:[#allocation64_spill] sm:$0xff] %v3037_v59  ;;  %v711_v58 = vmul.f32 %v2057_v1, %v549_v47  ;;  %v712_v5 = vmul.f32 %v2059_v6, %v549_v47  ;;  %v713_v51 = vmul.f32 %v2061_v8, %v549_v47  ;;  %v3628_v59 = vld [vmem:[#allocation82_spill] sm:$0xff]  ;;  %v3632_v6 = vld [vmem:[#allocation76_spill] sm:$0xff] }
 0x12d   :  { %3619 = vst [vmem:[#allocation65_spill] sm:$0xff] %v3040_v56  ;;  %3621 = vst [vmem:[#allocation66_spill] sm:$0xff] %v3043_v19  ;;  %v714_v12 = vmul.f32 %v2063_v18, %v549_v47  ;;  %v3054_v24 = vadd.f32 %v707_v0, %v3622_v52  ;;  %v3057_v33 = vadd.f32 %v708_v38, %v3624_v11  ;;  %v3626_v19 = vld [vmem:[#allocation81_spill] sm:$0xff]  ;;  %v3636_v47 = vld [vmem:[#allocation78_spill] sm:$0xff] }
 0x12e   :  { %v3060_v56 = vadd.f32 %v709_v60, %v3626_v19  ;;  %v3063_v13 = vadd.f32 %v710_v14, %v3628_v59  ;;  %v3066_v1 = vadd.f32 %v711_v58, %v3630_v55  ;;  %v3069_v3 = vadd.f32 %v712_v5, %v3632_v6  ;;  %v3634_v8 = vld [vmem:[#allocation77_spill] sm:$0xff]  ;;  %v3638_v38 = vld [vmem:[#allocation19_spill] sm:$0xff]  ;;  %v3639_v19 = vld [vmem:[#allocation20_spill] sm:$0xff] }
 0x12f   :  { %3623 = vst [vmem:[#allocation79_spill] sm:$0xff] %v3054_v24  ;;  %3625 = vst [vmem:[#allocation80_spill] sm:$0xff] %v3057_v33  ;;  %v3072_v18 = vadd.f32 %v713_v51, %v3634_v8  ;;  %v3075_v0 = vadd.f32 %v714_v12, %v3636_v47  ;;  %v3079_v52 = vadd.f32 %v2670_v10, %v3638_v38  ;;  %v3640_v60 = vld [vmem:[#allocation21_spill] sm:$0xff]  ;;  %v3641_v58 = vld [vmem:[#allocation22_spill] sm:$0xff]  ;;  %v845_v51 = vpop.permute.xlu1 %844 }
 0x130   :  { %3627 = vst [vmem:[#allocation81_spill] sm:$0xff] %v3060_v56  ;;  %3629 = vst [vmem:[#allocation82_spill] sm:$0xff] %v3063_v13  ;;  %v3083_v59 = vadd.f32 %v2673_v21, %v3639_v19  ;;  %v3087_v14 = vadd.f32 %v2676_v15, %v3640_v60  ;;  %v3091_v5 = vadd.f32 %v2679_v34, %v3641_v58  ;;  %v1263_v11 = vld [vmem:[#allocation2] sm:$0xff]  ;;  %v1264_v12 = vld [vmem:[#allocation2 + $0x8] sm:$0xff]  ;;  %v849_v19 = vpop.permute.xlu0 %848 }
 0x131   :  { %3631 = vst [vmem:[#allocation75_spill] sm:$0xff] %v3066_v1  ;;  %3633 = vst [vmem:[#allocation76_spill] sm:$0xff] %v3069_v3  ;;  %v3642_v55 = vld [vmem:[#allocation8_spill] sm:$0xff]  ;;  %v3643_v8 = vld [vmem:[#allocation9_spill] sm:$0xff] }
 0x132   :  { %3635 = vst [vmem:[#allocation77_spill] sm:$0xff] %v3072_v18  ;;  %3637 = vst [vmem:[#allocation78_spill] sm:$0xff] %v3075_v0  ;;  %v1007_v6 = vmul.f32 %v3642_v55, %v845_v51  ;;  %v1008_v10 = vmul.f32 %v3643_v8, %v845_v51  ;;  %v3644_v47 = vld [vmem:[#allocation10_spill] sm:$0xff]  ;;  %v3645_v0 = vld [vmem:[#allocation11_spill] sm:$0xff]  ;;  %v1011_v60 = vmul.f32 %v3642_v55, %v849_v19 }
 0x133   :  { %v1009_v38 = vmul.f32 %v3644_v47, %v845_v51  ;;  %v1010_v21 = vmul.f32 %v3645_v0, %v845_v51  ;;  %v1265_v18 = vld [vmem:[#allocation2 + $0x10] sm:$0xff]  ;;  %v1266_v3 = vld [vmem:[#allocation2 + $0x18] sm:$0xff]  ;;  %v1267_v15 = vld [vmem:[#allocation2 + $0x20] sm:$0xff]  ;;  %v1012_v34 = vmul.f32 %v3643_v8, %v849_v19  ;;  %v1013_v58 = vmul.f32 %v3644_v47, %v849_v19 }
 0x134   :  { %v1014_v1 = vmul.f32 %v3645_v0, %v849_v19  ;;  %v1135_v13 = vadd.f32 %v1007_v6, %v2630_v41  ;;  %v1136_v56 = vadd.f32 %v1008_v10, %v2633_v29  ;;  %v1268_v24 = vld [vmem:[#allocation2 + $0x28] sm:$0xff]  ;;  %v1270_v62 = vld [vmem:[#allocation2 + $0x38] sm:$0xff]  ;;  %v1139_v16 = vadd.f32 %v1011_v60, %v2578_v50  ;;  %v853_v19 = vpop.permute.xlu1 %852  ;;  %v861_v10 = vpop.permute.xlu0 %860  ;;  %v1271_v50 = vld [vmem:[#allocation2 + $0x40] sm:$0xff] }
 0x135   :  { %v1137_v33 = vadd.f32 %v1009_v38, %v2636_v42  ;;  %v1138_v51 = vadd.f32 %v1010_v21, %v2639_v45  ;;  %v1140_v40 = vadd.f32 %v1012_v34, %v2581_v53  ;;  %v1141_v43 = vadd.f32 %v1013_v58, %v3646_v31  ;;  %v1272_v53 = vld [vmem:[#allocation2 + $0x48] sm:$0xff] }
 0x136   :  { %v1142_v22 = vadd.f32 %v1014_v1, %v3647_v20  ;;  %v1391_v23 = vadd.f32 %v1263_v11, %v1135_v13  ;;  %v1392_v41 = vadd.f32 %v1264_v12, %v1136_v56  ;;  %v1395_v42 = vadd.f32 %v1267_v15, %v1139_v16  ;;  %v1280_v11 = vld [vmem:[#allocation2 + $0x88] sm:$0xff]  ;;  %v1281_v12 = vld [vmem:[#allocation2 + $0x90] sm:$0xff]  ;;  %v1282_v15 = vld [vmem:[#allocation2 + $0x98] sm:$0xff] }
 0x137   :  { %v1393_v6 = vadd.f32 %v1265_v18, %v1137_v33  ;;  %v1394_v29 = vadd.f32 %v1266_v3, %v1138_v51  ;;  %v1396_v38 = vadd.f32 %v1268_v24, %v1140_v40  ;;  %v1397_v45 = vadd.f32 %v1269_v28, %v1141_v43  ;;  %v1273_v3 = vld [vmem:[#allocation2 + $0x50] sm:$0xff] }
 0x138   :  { %v1398_v21 = vadd.f32 %v1270_v62, %v1142_v22  ;;  %1519 = vst [vmem:[#allocation5] sm:$0xff] %v1391_v23  ;;  %1520 = vst [vmem:[#allocation5 + $0x8] sm:$0xff] %v1392_v41  ;;  %v1015_v31 = vmul.f32 %v3642_v55, %v853_v19  ;;  %v1016_v20 = vmul.f32 %v3643_v8, %v853_v19  ;;  %v1274_v22 = vld [vmem:[#allocation2 + $0x58] sm:$0xff]  ;;  %v1279_v23 = vld [vmem:[#allocation2 + $0x80] sm:$0xff]  ;;  %v857_v62 = vpop.permute.xlu1 %856 }
 0x139   :  { %1521 = vst [vmem:[#allocation5 + $0x10] sm:$0xff] %v1393_v6  ;;  %1522 = vst [vmem:[#allocation5 + $0x18] sm:$0xff] %v1394_v29  ;;  %v1017_v13 = vmul.f32 %v3644_v47, %v853_v19  ;;  %v1018_v56 = vmul.f32 %v3645_v0, %v853_v19  ;;  %v1023_v43 = vmul.f32 %v3642_v55, %v861_v10 }
 0x13a   :  { %1523 = vst [vmem:[#allocation5 + $0x20] sm:$0xff] %v1395_v42  ;;  %1524 = vst [vmem:[#allocation5 + $0x28] sm:$0xff] %v1396_v38  ;;  %v1024_v40 = vmul.f32 %v3643_v8, %v861_v10  ;;  %v1025_v28 = vmul.f32 %v3644_v47, %v861_v10  ;;  %v1026_v16 = vmul.f32 %v3645_v0, %v861_v10 }
 0x13b   :  { %1525 = vst [vmem:[#allocation5 + $0x30] sm:$0xff] %v1397_v45  ;;  %1526 = vst [vmem:[#allocation5 + $0x38] sm:$0xff] %v1398_v21  ;;  %v1143_v24 = vadd.f32 %v1015_v31, %v2598_v46  ;;  %v1144_v33 = vadd.f32 %v1016_v20, %v2601_v32  ;;  %v1145_v1 = vadd.f32 %v1017_v13, %v2604_v2  ;;  %v869_v32 = vpop.permute.xlu0 %868  ;;  %v1277_v21 = vld [vmem:[#allocation2 + $0x70] sm:$0xff] }
 0x13c   :  { %v1146_v18 = vadd.f32 %v1018_v56, %v2607_v54  ;;  %v1151_v60 = vadd.f32 %v1023_v43, %v2654_v25  ;;  %v1152_v34 = vadd.f32 %v1024_v40, %v2657_v26  ;;  %v1153_v58 = vadd.f32 %v1025_v28, %v2660_v9  ;;  %v865_v42 = vpop.permute.xlu1 %864  ;;  %v1275_v25 = vld [vmem:[#allocation2 + $0x60] sm:$0xff]  ;;  %v1276_v26 = vld [vmem:[#allocation2 + $0x68] sm:$0xff]  ;;  %v1289_v28 = vld [vmem:[#allocation2 + $0xd0] sm:$0xff] }
 0x13d   :  { %v1154_v51 = vadd.f32 %v1026_v16, %v2663_v57  ;;  %v1399_v19 = vadd.f32 %v1271_v50, %v1143_v24  ;;  %v1400_v41 = vadd.f32 %v1272_v53, %v1144_v33  ;;  %v1401_v46 = vadd.f32 %v1273_v3, %v1145_v1  ;;  %v1278_v50 = vld [vmem:[#allocation2 + $0x78] sm:$0xff]  ;;  %v1287_v53 = vld [vmem:[#allocation2 + $0xc0] sm:$0xff]  ;;  %v1288_v40 = vld [vmem:[#allocation2 + $0xc8] sm:$0xff] }
 0x13e   :  { %v1402_v6 = vadd.f32 %v1274_v22, %v1146_v18  ;;  %v1407_v29 = vadd.f32 %v1279_v23, %v1151_v60  ;;  %v1408_v2 = vadd.f32 %v1280_v11, %v1152_v34  ;;  %v1409_v10 = vadd.f32 %v1281_v12, %v1153_v58  ;;  %v1290_v16 = vld [vmem:[#allocation2 + $0xd8] sm:$0xff] }
 0x13f   :  { %v1410_v54 = vadd.f32 %v1282_v15, %v1154_v51  ;;  %1527 = vst [vmem:[#allocation5 + $0x40] sm:$0xff] %v1399_v19  ;;  %1528 = vst [vmem:[#allocation5 + $0x48] sm:$0xff] %v1400_v41  ;;  %v1019_v9 = vmul.f32 %v3642_v55, %v857_v62  ;;  %v1020_v57 = vmul.f32 %v3643_v8, %v857_v62  ;;  %v1285_v19 = vld [vmem:[#allocation2 + $0xb0] sm:$0xff]  ;;  %v1286_v41 = vld [vmem:[#allocation2 + $0xb8] sm:$0xff] }
 0x140   :  { %1529 = vst [vmem:[#allocation5 + $0x50] sm:$0xff] %v1401_v46  ;;  %1530 = vst [vmem:[#allocation5 + $0x58] sm:$0xff] %v1402_v6  ;;  %v1021_v38 = vmul.f32 %v3644_v47, %v857_v62  ;;  %v1022_v45 = vmul.f32 %v3645_v0, %v857_v62  ;;  %v1031_v31 = vmul.f32 %v3642_v55, %v869_v32  ;;  %v873_v15 = vpop.permute.xlu1 %872  ;;  %v1295_v46 = vld [vmem:[#allocation2 + $0x100] sm:$0xff] }
 0x141   :  { %1535 = vst [vmem:[#allocation5 + $0x80] sm:$0xff] %v1407_v29  ;;  %1536 = vst [vmem:[#allocation5 + $0x88] sm:$0xff] %v1408_v2  ;;  %v1032_v20 = vmul.f32 %v3643_v8, %v869_v32  ;;  %v1033_v13 = vmul.f32 %v3644_v47, %v869_v32  ;;  %v1034_v56 = vmul.f32 %v3645_v0, %v869_v32 }
 0x142   :  { %1537 = vst [vmem:[#allocation5 + $0x90] sm:$0xff] %v1409_v10  ;;  %1538 = vst [vmem:[#allocation5 + $0x98] sm:$0xff] %v1410_v54  ;;  %v1147_v3 = vadd.f32 %v1019_v9, %v2610_v63  ;;  %v1148_v22 = vadd.f32 %v1020_v57, %v2613_v35  ;;  %v1149_v23 = vadd.f32 %v1021_v38, %v2616_v39  ;;  %v877_v35 = vpop.permute.xlu0 %876  ;;  %v3648_v54 = vld [vmem:[#allocation99_spill] sm:$0xff]  ;;  %v3650_v9 = vld [vmem:[#allocation101_spill] sm:$0xff] }
 0x143   :  { %v1150_v43 = vadd.f32 %v1022_v45, %v2619_v27  ;;  %v1159_v62 = vadd.f32 %v1031_v31, %v3079_v52  ;;  %v1160_v24 = vadd.f32 %v1032_v20, %v3083_v59  ;;  %v1161_v33 = vadd.f32 %v1033_v13, %v3087_v14  ;;  %v1283_v52 = vld [vmem:[#allocation2 + $0xa0] sm:$0xff]  ;;  %v1284_v59 = vld [vmem:[#allocation2 + $0xa8] sm:$0xff]  ;;  %v1297_v45 = vld [vmem:[#allocation2 + $0x110] sm:$0xff] }
 0x144   :  { %v1162_v1 = vadd.f32 %v1034_v56, %v3091_v5  ;;  %v1403_v18 = vadd.f32 %v1275_v25, %v1147_v3  ;;  %v1404_v11 = vadd.f32 %v1276_v26, %v1148_v22  ;;  %v1405_v63 = vadd.f32 %v1277_v21, %v1149_v23  ;;  %v1296_v38 = vld [vmem:[#allocation2 + $0x108] sm:$0xff]  ;;  %v1298_v21 = vld [vmem:[#allocation2 + $0x118] sm:$0xff]  ;;  %v3652_v20 = vld [vmem:[#allocation104_spill] sm:$0xff] }
 0x145   :  { %v1406_v12 = vadd.f32 %v1278_v50, %v1150_v43  ;;  %v1415_v39 = vadd.f32 %v1287_v53, %v1159_v62  ;;  %v1416_v60 = vadd.f32 %v1288_v40, %v1160_v24  ;;  %v1417_v27 = vadd.f32 %v1289_v28, %v1161_v33  ;;  %v3651_v53 = vld [vmem:[#allocation103_spill] sm:$0xff]  ;;  %v881_v28 = vpop.permute.xlu1 %880 }
 0x146   :  { %v1418_v34 = vadd.f32 %v1290_v16, %v1162_v1  ;;  %1531 = vst [vmem:[#allocation5 + $0x60] sm:$0xff] %v1403_v18  ;;  %1532 = vst [vmem:[#allocation5 + $0x68] sm:$0xff] %v1404_v11  ;;  %v1027_v14 = vmul.f32 %v3642_v55, %v865_v42  ;;  %v1028_v5 = vmul.f32 %v3643_v8, %v865_v42  ;;  %v3653_v56 = vld [vmem:[#allocation31_spill] sm:$0xff]  ;;  %v885_v40 = vpop.permute.xlu0 %884  ;;  %v1292_v1 = vld [vmem:[#allocation2 + $0xe8] sm:$0xff] }
 0x147   :  { %1533 = vst [vmem:[#allocation5 + $0x70] sm:$0xff] %v1405_v63  ;;  %1534 = vst [vmem:[#allocation5 + $0x78] sm:$0xff] %v1406_v12  ;;  %v1029_v58 = vmul.f32 %v3644_v47, %v865_v42  ;;  %v1030_v51 = vmul.f32 %v3645_v0, %v865_v42  ;;  %v1039_v6 = vmul.f32 %v3642_v55, %v877_v35  ;;  %v3649_v42 = vld [vmem:[#allocation100_spill] sm:$0xff] }
 0x148   :  { %1543 = vst [vmem:[#allocation5 + $0xc0] sm:$0xff] %v1415_v39  ;;  %1544 = vst [vmem:[#allocation5 + $0xc8] sm:$0xff] %v1416_v60  ;;  %v1040_v32 = vmul.f32 %v3643_v8, %v877_v35  ;;  %v1041_v29 = vmul.f32 %v3644_v47, %v877_v35  ;;  %v1042_v2 = vmul.f32 %v3645_v0, %v877_v35  ;;  %v1293_v35 = vld [vmem:[#allocation2 + $0xf0] sm:$0xff]  ;;  %v1294_v39 = vld [vmem:[#allocation2 + $0xf8] sm:$0xff] }
 0x149   :  { %1545 = vst [vmem:[#allocation5 + $0xd0] sm:$0xff] %v1417_v27  ;;  %1546 = vst [vmem:[#allocation5 + $0xd8] sm:$0xff] %v1418_v34  ;;  %v1155_v10 = vadd.f32 %v1027_v14, %v2642_v7  ;;  %v1156_v25 = vadd.f32 %v1028_v5, %v3648_v54  ;;  %v1157_v26 = vadd.f32 %v1029_v58, %v3649_v42  ;;  %v1303_v60 = vld [vmem:[#allocation2 + $0x140] sm:$0xff]  ;;  %v3655_v58 = vld [vmem:[#allocation13_spill] sm:$0xff] }
 0x14a   :  { %v1158_v57 = vadd.f32 %v1030_v51, %v3650_v9  ;;  %v1167_v50 = vadd.f32 %v1039_v6, %v2702_v30  ;;  %v1168_v31 = vadd.f32 %v1040_v32, %v3651_v53  ;;  %v1169_v13 = vadd.f32 %v1041_v29, %v3652_v20  ;;  %v1291_v30 = vld [vmem:[#allocation2 + $0xe0] sm:$0xff]  ;;  %v1304_v6 = vld [vmem:[#allocation2 + $0x148] sm:$0xff]  ;;  %v1305_v32 = vld [vmem:[#allocation2 + $0x150] sm:$0xff] }
 0x14b   :  { %v1170_v3 = vadd.f32 %v1042_v2, %v3653_v56  ;;  %v1411_v22 = vadd.f32 %v1283_v52, %v1155_v10  ;;  %v1412_v23 = vadd.f32 %v1284_v59, %v1156_v25  ;;  %v1413_v7 = vadd.f32 %v1285_v19, %v1157_v26  ;;  %v3654_v14 = vld [vmem:[#allocation12_spill] sm:$0xff]  ;;  %v1306_v29 = vld [vmem:[#allocation2 + $0x158] sm:$0xff]  ;;  %v1301_v56 = vld [vmem:[#allocation2 + $0x130] sm:$0xff] }
 0x14c   :  { %v1414_v43 = vadd.f32 %v1286_v41, %v1158_v57  ;;  %v1423_v16 = vadd.f32 %v1295_v46, %v1167_v50  ;;  %v1424_v62 = vadd.f32 %v1296_v38, %v1168_v31  ;;  %v1425_v24 = vadd.f32 %v1297_v45, %v1169_v13  ;;  %v3657_v41 = vld [vmem:[#allocation102_spill] sm:$0xff]  ;;  %v893_v38 = vpop.permute.xlu0 %892  ;;  %v889_v45 = vpop.permute.xlu1 %888 }
 0x14d   :  { %v1426_v33 = vadd.f32 %v1298_v21, %v1170_v3  ;;  %1539 = vst [vmem:[#allocation5 + $0xa0] sm:$0xff] %v1411_v22  ;;  %1540 = vst [vmem:[#allocation5 + $0xa8] sm:$0xff] %v1412_v23  ;;  %v1035_v18 = vmul.f32 %v3642_v55, %v873_v15  ;;  %v1036_v11 = vmul.f32 %v3643_v8, %v873_v15  ;;  %v1302_v3 = vld [vmem:[#allocation2 + $0x138] sm:$0xff]  ;;  %v1311_v22 = vld [vmem:[#allocation2 + $0x180] sm:$0xff] }
 0x14e   :  { %1541 = vst [vmem:[#allocation5 + $0xb0] sm:$0xff] %v1413_v7  ;;  %1542 = vst [vmem:[#allocation5 + $0xb8] sm:$0xff] %v1414_v43  ;;  %v1037_v63 = vmul.f32 %v3644_v47, %v873_v15  ;;  %v1038_v12 = vmul.f32 %v3645_v0, %v873_v15  ;;  %v1047_v27 = vmul.f32 %v3642_v55, %v885_v40  ;;  %v3656_v15 = vld [vmem:[#allocation18_spill] sm:$0xff] }
 0x14f   :  { %1551 = vst [vmem:[#allocation5 + $0x100] sm:$0xff] %v1423_v16  ;;  %1552 = vst [vmem:[#allocation5 + $0x108] sm:$0xff] %v1424_v62  ;;  %v1048_v34 = vmul.f32 %v3643_v8, %v885_v40  ;;  %v1049_v52 = vmul.f32 %v3644_v47, %v885_v40  ;;  %v1050_v59 = vmul.f32 %v3645_v0, %v885_v40  ;;  %v3658_v16 = vld [vmem:[#allocation23_spill] sm:$0xff] }
 0x150   :  { %1553 = vst [vmem:[#allocation5 + $0x110] sm:$0xff] %v1425_v24  ;;  %1554 = vst [vmem:[#allocation5 + $0x118] sm:$0xff] %v1426_v33  ;;  %v1163_v5 = vadd.f32 %v1035_v18, %v3654_v14  ;;  %v1164_v51 = vadd.f32 %v1036_v11, %v3655_v58  ;;  %v1165_v19 = vadd.f32 %v1037_v63, %v3656_v15  ;;  %v3659_v24 = vld [vmem:[#allocation24_spill] sm:$0xff]  ;;  %v1312_v11 = vld [vmem:[#allocation2 + $0x188] sm:$0xff]  ;;  %v897_v58 = vpop.permute.xlu1 %896 }
 0x151   :  { %v1166_v46 = vadd.f32 %v1038_v12, %v3657_v41  ;;  %v1175_v2 = vadd.f32 %v1047_v27, %v2734_v61  ;;  %v1176_v10 = vadd.f32 %v1048_v34, %v2737_v4  ;;  %v1177_v54 = vadd.f32 %v1049_v52, %v2740_v37  ;;  %v1299_v61 = vld [vmem:[#allocation2 + $0x120] sm:$0xff]  ;;  %v1300_v4 = vld [vmem:[#allocation2 + $0x128] sm:$0xff]  ;;  %v1313_v63 = vld [vmem:[#allocation2 + $0x190] sm:$0xff] }
 0x152   :  { %v1178_v25 = vadd.f32 %v1050_v59, %v2743_v17  ;;  %v1419_v42 = vadd.f32 %v1291_v30, %v1163_v5  ;;  %v1420_v26 = vadd.f32 %v1292_v1, %v1164_v51  ;;  %v1421_v9 = vadd.f32 %v1293_v35, %v1165_v19  ;;  %v3661_v1 = vld [vmem:[#allocation26_spill] sm:$0xff]  ;;  %v1314_v12 = vld [vmem:[#allocation2 + $0x198] sm:$0xff]  ;;  %v901_v5 = vpop.permute.xlu0 %900 }
 0x153   :  { %v1422_v57 = vadd.f32 %v1294_v39, %v1166_v46  ;;  %v1431_v21 = vadd.f32 %v1303_v60, %v1175_v2  ;;  %v1432_v50 = vadd.f32 %v1304_v6, %v1176_v10  ;;  %v1433_v53 = vadd.f32 %v1305_v32, %v1177_v54  ;;  %v1309_v32 = vld [vmem:[#allocation2 + $0x170] sm:$0xff]  ;;  %v1319_v2 = vld [vmem:[#allocation2 + $0x1c0] sm:$0xff] }
 0x154   :  { %v1434_v31 = vadd.f32 %v1306_v29, %v1178_v25  ;;  %1547 = vst [vmem:[#allocation5 + $0xe0] sm:$0xff] %v1419_v42  ;;  %1548 = vst [vmem:[#allocation5 + $0xe8] sm:$0xff] %v1420_v26  ;;  %v1043_v37 = vmul.f32 %v3642_v55, %v881_v28  ;;  %v1044_v17 = vmul.f32 %v3643_v8, %v881_v28  ;;  %v1310_v29 = vld [vmem:[#allocation2 + $0x178] sm:$0xff]  ;;  %v3662_v26 = vld [vmem:[#allocation36_spill] sm:$0xff] }
 0x155   :  { %1549 = vst [vmem:[#allocation5 + $0xf0] sm:$0xff] %v1421_v9  ;;  %1550 = vst [vmem:[#allocation5 + $0xf8] sm:$0xff] %v1422_v57  ;;  %v1045_v20 = vmul.f32 %v3644_v47, %v881_v28  ;;  %v1046_v13 = vmul.f32 %v3645_v0, %v881_v28  ;;  %v1055_v23 = vmul.f32 %v3642_v55, %v893_v38  ;;  %v3660_v28 = vld [vmem:[#allocation25_spill] sm:$0xff] }
 0x156   :  { %1559 = vst [vmem:[#allocation5 + $0x140] sm:$0xff] %v1431_v21  ;;  %1560 = vst [vmem:[#allocation5 + $0x148] sm:$0xff] %v1432_v50  ;;  %v1056_v7 = vmul.f32 %v3643_v8, %v893_v38  ;;  %v1057_v43 = vmul.f32 %v3644_v47, %v893_v38  ;;  %v1058_v40 = vmul.f32 %v3645_v0, %v893_v38  ;;  %v3663_v57 = vld [vmem:[#allocation37_spill] sm:$0xff]  ;;  %v3665_v50 = vld [vmem:[#allocation32_spill] sm:$0xff] }
 0x157   :  { %1561 = vst [vmem:[#allocation5 + $0x150] sm:$0xff] %v1433_v53  ;;  %1562 = vst [vmem:[#allocation5 + $0x158] sm:$0xff] %v1434_v31  ;;  %v1171_v62 = vadd.f32 %v1043_v37, %v3658_v16  ;;  %v1172_v33 = vadd.f32 %v1044_v17, %v3659_v24  ;;  %v1173_v30 = vadd.f32 %v1045_v20, %v3660_v28  ;;  %v1320_v31 = vld [vmem:[#allocation2 + $0x1c8] sm:$0xff]  ;;  %v3666_v37 = vld [vmem:[#allocation48_spill] sm:$0xff]  ;;  %v905_v24 = vpop.permute.xlu1 %904 }
 0x158   :  { %v1174_v18 = vadd.f32 %v1046_v13, %v3661_v1  ;;  %v1183_v35 = vadd.f32 %v1055_v23, %v2766_v36  ;;  %v1184_v39 = vadd.f32 %v1056_v7, %v2769_v49  ;;  %v1185_v60 = vadd.f32 %v1057_v43, %v2772_v48  ;;  %v1307_v36 = vld [vmem:[#allocation2 + $0x160] sm:$0xff]  ;;  %v1308_v49 = vld [vmem:[#allocation2 + $0x168] sm:$0xff] }
 0x159   :  { %v1186_v27 = vadd.f32 %v1058_v40, %v2775_v44  ;;  %v1427_v34 = vadd.f32 %v1299_v61, %v1171_v62  ;;  %v1428_v52 = vadd.f32 %v1300_v4, %v1172_v33  ;;  %v1429_v59 = vadd.f32 %v1301_v56, %v1173_v30  ;;  %v1321_v61 = vld [vmem:[#allocation2 + $0x1d0] sm:$0xff]  ;;  %v1322_v4 = vld [vmem:[#allocation2 + $0x1d8] sm:$0xff]  ;;  %v3667_v20 = vld [vmem:[#allocation49_spill] sm:$0xff]  ;;  %v909_v62 = vpop.permute.xlu0 %908 }
 0x15a   :  { %v1430_v14 = vadd.f32 %v1302_v3, %v1174_v18  ;;  %v1439_v51 = vadd.f32 %v1311_v22, %v1183_v35  ;;  %v1440_v15 = vadd.f32 %v1312_v11, %v1184_v39  ;;  %v1441_v19 = vadd.f32 %v1313_v63, %v1185_v60  ;;  %v3668_v56 = vld [vmem:[#allocation50_spill] sm:$0xff]  ;;  %v3669_v22 = vld [vmem:[#allocation105_spill] sm:$0xff]  ;;  %v1315_v18 = vld [vmem:[#allocation2 + $0x1a0] sm:$0xff] }
 0x15b   :  { %v1442_v41 = vadd.f32 %v1314_v12, %v1186_v27  ;;  %1555 = vst [vmem:[#allocation5 + $0x120] sm:$0xff] %v1427_v34  ;;  %1556 = vst [vmem:[#allocation5 + $0x128] sm:$0xff] %v1428_v52  ;;  %v1051_v48 = vmul.f32 %v3642_v55, %v889_v45  ;;  %v1052_v44 = vmul.f32 %v3643_v8, %v889_v45  ;;  %v1316_v11 = vld [vmem:[#allocation2 + $0x1a8] sm:$0xff]  ;;  %v1317_v60 = vld [vmem:[#allocation2 + $0x1b0] sm:$0xff] }
 0x15c   :  { %1557 = vst [vmem:[#allocation5 + $0x130] sm:$0xff] %v1429_v59  ;;  %1558 = vst [vmem:[#allocation5 + $0x138] sm:$0xff] %v1430_v14  ;;  %v1053_v46 = vmul.f32 %v3644_v47, %v889_v45  ;;  %v1054_v6 = vmul.f32 %v3645_v0, %v889_v45  ;;  %v1063_v10 = vmul.f32 %v3642_v55, %v901_v5  ;;  %v3664_v45 = vld [vmem:[#allocation38_spill] sm:$0xff]  ;;  %v1318_v27 = vld [vmem:[#allocation2 + $0x1b8] sm:$0xff] }
 0x15d   :  { %1567 = vst [vmem:[#allocation5 + $0x180] sm:$0xff] %v1439_v51  ;;  %1568 = vst [vmem:[#allocation5 + $0x188] sm:$0xff] %v1440_v15  ;;  %v1064_v54 = vmul.f32 %v3643_v8, %v901_v5  ;;  %v1065_v25 = vmul.f32 %v3644_v47, %v901_v5  ;;  %v1066_v42 = vmul.f32 %v3645_v0, %v901_v5  ;;  %v1327_v34 = vld [vmem:[#allocation2 + $0x200] sm:$0xff]  ;;  %v3670_v51 = vld [vmem:[#allocation33_spill] sm:$0xff] }
 0x15e   :  { %1569 = vst [vmem:[#allocation5 + $0x190] sm:$0xff] %v1441_v19  ;;  %1570 = vst [vmem:[#allocation5 + $0x198] sm:$0xff] %v1442_v41  ;;  %v1179_v9 = vadd.f32 %v1051_v48, %v3662_v26  ;;  %v1180_v38 = vadd.f32 %v1052_v44, %v3663_v57  ;;  %v1181_v21 = vadd.f32 %v1053_v46, %v3664_v45  ;;  %v3671_v19 = vld [vmem:[#allocation34_spill] sm:$0xff]  ;;  %v1328_v44 = vld [vmem:[#allocation2 + $0x208] sm:$0xff] }
 0x15f   :  { %v1182_v53 = vadd.f32 %v1054_v6, %v3665_v50  ;;  %v1191_v17 = vadd.f32 %v1063_v10, %v3666_v37  ;;  %v1192_v13 = vadd.f32 %v1064_v54, %v3667_v20  ;;  %v1193_v3 = vadd.f32 %v1065_v25, %v3668_v56  ;;  %v1329_v46 = vld [vmem:[#allocation2 + $0x210] sm:$0xff]  ;;  %v1330_v6 = vld [vmem:[#allocation2 + $0x218] sm:$0xff]  ;;  %v3676_v54 = vld [vmem:[#allocation108_spill] sm:$0xff]  ;;  %v913_v50 = vpop.permute.xlu1 %912 }
 0x160   :  { %v1194_v23 = vadd.f32 %v1066_v42, %v3669_v22  ;;  %v1435_v7 = vadd.f32 %v1307_v36, %v1179_v9  ;;  %v1436_v43 = vadd.f32 %v1308_v49, %v1180_v38  ;;  %v1437_v40 = vadd.f32 %v1309_v32, %v1181_v21  ;;  %v3673_v49 = vld [vmem:[#allocation47_spill] sm:$0xff]  ;;  %v3674_v32 = vld [vmem:[#allocation106_spill] sm:$0xff]  ;;  %v3677_v42 = vld [vmem:[#allocation109_spill] sm:$0xff]  ;;  %v917_v21 = vpop.permute.xlu0 %916 }
 0x161   :  { %v1438_v16 = vadd.f32 %v1310_v29, %v1182_v53  ;;  %v1447_v33 = vadd.f32 %v1319_v2, %v1191_v17  ;;  %v1448_v28 = vadd.f32 %v1320_v31, %v1192_v13  ;;  %v1449_v30 = vadd.f32 %v1321_v61, %v1193_v3  ;;  %v3675_v2 = vld [vmem:[#allocation107_spill] sm:$0xff]  ;;  %v1323_v37 = vld [vmem:[#allocation2 + $0x1e0] sm:$0xff]  ;;  %v1324_v17 = vld [vmem:[#allocation2 + $0x1e8] sm:$0xff] }
 0x162   :  { %v1450_v1 = vadd.f32 %v1322_v4, %v1194_v23  ;;  %1563 = vst [vmem:[#allocation5 + $0x160] sm:$0xff] %v1435_v7  ;;  %1564 = vst [vmem:[#allocation5 + $0x168] sm:$0xff] %v1436_v43  ;;  %v1059_v63 = vmul.f32 %v3642_v55, %v897_v58  ;;  %v1060_v12 = vmul.f32 %v3643_v8, %v897_v58  ;;  %v1325_v22 = vld [vmem:[#allocation2 + $0x1f0] sm:$0xff]  ;;  %v1326_v23 = vld [vmem:[#allocation2 + $0x1f8] sm:$0xff] }
 0x163   :  { %1565 = vst [vmem:[#allocation5 + $0x170] sm:$0xff] %v1437_v40  ;;  %1566 = vst [vmem:[#allocation5 + $0x178] sm:$0xff] %v1438_v16  ;;  %v1061_v35 = vmul.f32 %v3644_v47, %v897_v58  ;;  %v1062_v39 = vmul.f32 %v3645_v0, %v897_v58  ;;  %v1071_v52 = vmul.f32 %v3642_v55, %v909_v62  ;;  %v3672_v58 = vld [vmem:[#allocation35_spill] sm:$0xff]  ;;  %v1335_v7 = vld [vmem:[#allocation2 + $0x240] sm:$0xff] }
 0x164   :  { %1575 = vst [vmem:[#allocation5 + $0x1c0] sm:$0xff] %v1447_v33  ;;  %1576 = vst [vmem:[#allocation5 + $0x1c8] sm:$0xff] %v1448_v28  ;;  %v1072_v59 = vmul.f32 %v3643_v8, %v909_v62  ;;  %v1073_v14 = vmul.f32 %v3644_v47, %v909_v62  ;;  %v1074_v5 = vmul.f32 %v3645_v0, %v909_v62  ;;  %v3678_v33 = vld [vmem:[#allocation59_spill] sm:$0xff] }
 0x165   :  { %1577 = vst [vmem:[#allocation5 + $0x1d0] sm:$0xff] %v1449_v30  ;;  %1578 = vst [vmem:[#allocation5 + $0x1d8] sm:$0xff] %v1450_v1  ;;  %v1187_v15 = vadd.f32 %v1059_v63, %v3670_v51  ;;  %v1188_v41 = vadd.f32 %v1060_v12, %v3671_v19  ;;  %v1189_v36 = vadd.f32 %v1061_v35, %v3672_v58  ;;  %v3679_v30 = vld [vmem:[#allocation60_spill] sm:$0xff]  ;;  %v1336_v12 = vld [vmem:[#allocation2 + $0x248] sm:$0xff] }
 0x166   :  { %v1190_v48 = vadd.f32 %v1062_v39, %v3673_v49  ;;  %v1199_v29 = vadd.f32 %v1071_v52, %v3674_v32  ;;  %v1200_v10 = vadd.f32 %v1072_v59, %v3675_v2  ;;  %v1201_v25 = vadd.f32 %v1073_v14, %v3676_v54  ;;  %v1337_v35 = vld [vmem:[#allocation2 + $0x250] sm:$0xff]  ;;  %v1338_v39 = vld [vmem:[#allocation2 + $0x258] sm:$0xff]  ;;  %v921_v49 = vpop.permute.xlu1 %920  ;;  %v1331_v32 = vld [vmem:[#allocation2 + $0x220] sm:$0xff] }
 0x167   :  { %v1202_v26 = vadd.f32 %v1074_v5, %v3677_v42  ;;  %v1443_v9 = vadd.f32 %v1315_v18, %v1187_v15  ;;  %v1444_v57 = vadd.f32 %v1316_v11, %v1188_v41  ;;  %v1445_v38 = vadd.f32 %v1317_v60, %v1189_v36  ;;  %v3681_v11 = vld [vmem:[#allocation62_spill] sm:$0xff]  ;;  %v3684_v59 = vld [vmem:[#allocation87_spill] sm:$0xff]  ;;  %v3685_v5 = vld [vmem:[#allocation88_spill] sm:$0xff]  ;;  %v925_v36 = vpop.permute.xlu0 %924 }
 0x168   :  { %v1446_v45 = vadd.f32 %v1318_v27, %v1190_v48  ;;  %v1455_v53 = vadd.f32 %v1327_v34, %v1199_v29  ;;  %v1456_v31 = vadd.f32 %v1328_v44, %v1200_v10  ;;  %v1457_v61 = vadd.f32 %v1329_v46, %v1201_v25  ;;  %v3682_v60 = vld [vmem:[#allocation110_spill] sm:$0xff]  ;;  %v3683_v34 = vld [vmem:[#allocation111_spill] sm:$0xff]  ;;  %v1332_v29 = vld [vmem:[#allocation2 + $0x228] sm:$0xff] }
 0x169   :  { %v1458_v4 = vadd.f32 %v1330_v6, %v1202_v26  ;;  %1571 = vst [vmem:[#allocation5 + $0x1a0] sm:$0xff] %v1443_v9  ;;  %1572 = vst [vmem:[#allocation5 + $0x1a8] sm:$0xff] %v1444_v57  ;;  %v1067_v20 = vmul.f32 %v3642_v55, %v905_v24  ;;  %v1068_v13 = vmul.f32 %v3643_v8, %v905_v24  ;;  %v1333_v42 = vld [vmem:[#allocation2 + $0x230] sm:$0xff]  ;;  %v1334_v26 = vld [vmem:[#allocation2 + $0x238] sm:$0xff] }
 0x16a   :  { %1573 = vst [vmem:[#allocation5 + $0x1b0] sm:$0xff] %v1445_v38  ;;  %1574 = vst [vmem:[#allocation5 + $0x1b8] sm:$0xff] %v1446_v45  ;;  %v1069_v56 = vmul.f32 %v3644_v47, %v905_v24  ;;  %v1070_v3 = vmul.f32 %v3645_v0, %v905_v24  ;;  %v1079_v43 = vmul.f32 %v3642_v55, %v917_v21  ;;  %v3680_v24 = vld [vmem:[#allocation61_spill] sm:$0xff]  ;;  %v1343_v9 = vld [vmem:[#allocation2 + $0x280] sm:$0xff] }
 0x16b   :  { %1583 = vst [vmem:[#allocation5 + $0x200] sm:$0xff] %v1455_v53  ;;  %1584 = vst [vmem:[#allocation5 + $0x208] sm:$0xff] %v1456_v31  ;;  %v1080_v40 = vmul.f32 %v3643_v8, %v917_v21  ;;  %v1081_v16 = vmul.f32 %v3644_v47, %v917_v21  ;;  %v1082_v62 = vmul.f32 %v3645_v0, %v917_v21  ;;  %v3686_v53 = vld [vmem:[#allocation71_spill] sm:$0xff] }
 0x16c   :  { %1585 = vst [vmem:[#allocation5 + $0x210] sm:$0xff] %v1457_v61  ;;  %1586 = vst [vmem:[#allocation5 + $0x218] sm:$0xff] %v1458_v4  ;;  %v1195_v28 = vadd.f32 %v1067_v20, %v3678_v33  ;;  %v1196_v1 = vadd.f32 %v1068_v13, %v3679_v30  ;;  %v1197_v18 = vadd.f32 %v1069_v56, %v3680_v24  ;;  %v3687_v61 = vld [vmem:[#allocation72_spill] sm:$0xff]  ;;  %v1344_v13 = vld [vmem:[#allocation2 + $0x288] sm:$0xff] }
 0x16d   :  { %v1198_v63 = vadd.f32 %v1070_v3, %v3681_v11  ;;  %v1207_v27 = vadd.f32 %v1079_v43, %v3682_v60  ;;  %v1208_v52 = vadd.f32 %v1080_v40, %v3683_v34  ;;  %v1209_v14 = vadd.f32 %v1081_v16, %v3684_v59  ;;  %v1345_v56 = vld [vmem:[#allocation2 + $0x290] sm:$0xff]  ;;  %v1346_v3 = vld [vmem:[#allocation2 + $0x298] sm:$0xff]  ;;  %v929_v11 = vpop.permute.xlu1 %928  ;;  %v1339_v60 = vld [vmem:[#allocation2 + $0x260] sm:$0xff] }
 0x16e   :  { %v1210_v51 = vadd.f32 %v1082_v62, %v3685_v5  ;;  %v1451_v15 = vadd.f32 %v1323_v37, %v1195_v28  ;;  %v1452_v19 = vadd.f32 %v1324_v17, %v1196_v1  ;;  %v1453_v41 = vadd.f32 %v1325_v22, %v1197_v18  ;;  %v3689_v17 = vld [vmem:[#allocation74_spill] sm:$0xff]  ;;  %v3690_v22 = vld [vmem:[#allocation89_spill] sm:$0xff]  ;;  %v3692_v40 = vld [vmem:[#allocation91_spill] sm:$0xff]  ;;  %v933_v18 = vpop.permute.xlu0 %932 }
 0x16f   :  { %v1454_v58 = vadd.f32 %v1326_v23, %v1198_v63  ;;  %v1463_v48 = vadd.f32 %v1335_v7, %v1207_v27  ;;  %v1464_v44 = vadd.f32 %v1336_v12, %v1208_v52  ;;  %v1465_v46 = vadd.f32 %v1337_v35, %v1209_v14  ;;  %v3691_v7 = vld [vmem:[#allocation90_spill] sm:$0xff]  ;;  %v3693_v62 = vld [vmem:[#allocation92_spill] sm:$0xff]  ;;  %v1340_v27 = vld [vmem:[#allocation2 + $0x268] sm:$0xff] }
 0x170   :  { %v1466_v6 = vadd.f32 %v1338_v39, %v1210_v51  ;;  %1579 = vst [vmem:[#allocation5 + $0x1e0] sm:$0xff] %v1451_v15  ;;  %1580 = vst [vmem:[#allocation5 + $0x1e8] sm:$0xff] %v1452_v19  ;;  %v1075_v2 = vmul.f32 %v3642_v55, %v913_v50  ;;  %v1076_v10 = vmul.f32 %v3643_v8, %v913_v50  ;;  %v1341_v5 = vld [vmem:[#allocation2 + $0x270] sm:$0xff]  ;;  %v1342_v51 = vld [vmem:[#allocation2 + $0x278] sm:$0xff] }
 0x171   :  { %1581 = vst [vmem:[#allocation5 + $0x1f0] sm:$0xff] %v1453_v41  ;;  %1582 = vst [vmem:[#allocation5 + $0x1f8] sm:$0xff] %v1454_v58  ;;  %v1077_v54 = vmul.f32 %v3644_v47, %v913_v50  ;;  %v1078_v25 = vmul.f32 %v3645_v0, %v913_v50  ;;  %v1087_v57 = vmul.f32 %v3642_v55, %v925_v36  ;;  %v3688_v50 = vld [vmem:[#allocation73_spill] sm:$0xff]  ;;  %v1351_v15 = vld [vmem:[#allocation2 + $0x2c0] sm:$0xff] }
 0x172   :  { %1591 = vst [vmem:[#allocation5 + $0x240] sm:$0xff] %v1463_v48  ;;  %1592 = vst [vmem:[#allocation5 + $0x248] sm:$0xff] %v1464_v44  ;;  %v1088_v38 = vmul.f32 %v3643_v8, %v925_v36  ;;  %v1089_v45 = vmul.f32 %v3644_v47, %v925_v36  ;;  %v1090_v21 = vmul.f32 %v3645_v0, %v925_v36  ;;  %v3694_v48 = vld [vmem:[#allocation83_spill] sm:$0xff] }
 0x173   :  { %1593 = vst [vmem:[#allocation5 + $0x250] sm:$0xff] %v1465_v46  ;;  %1594 = vst [vmem:[#allocation5 + $0x258] sm:$0xff] %v1466_v6  ;;  %v1203_v31 = vadd.f32 %v1075_v2, %v3686_v53  ;;  %v1204_v4 = vadd.f32 %v1076_v10, %v3687_v61  ;;  %v1205_v37 = vadd.f32 %v1077_v54, %v3688_v50  ;;  %v3695_v46 = vld [vmem:[#allocation84_spill] sm:$0xff]  ;;  %v1352_v10 = vld [vmem:[#allocation2 + $0x2c8] sm:$0xff] }
 0x174   :  { %v1206_v20 = vadd.f32 %v1078_v25, %v3689_v17  ;;  %v1215_v23 = vadd.f32 %v1087_v57, %v3690_v22  ;;  %v1216_v43 = vadd.f32 %v1088_v38, %v3691_v7  ;;  %v1217_v16 = vadd.f32 %v1089_v45, %v3692_v40  ;;  %v1353_v54 = vld [vmem:[#allocation2 + $0x2d0] sm:$0xff]  ;;  %v1354_v25 = vld [vmem:[#allocation2 + $0x2d8] sm:$0xff]  ;;  %v937_v17 = vpop.permute.xlu1 %936  ;;  %v1347_v22 = vld [vmem:[#allocation2 + $0x2a0] sm:$0xff] }
 0x175   :  { %v1218_v33 = vadd.f32 %v1090_v21, %v3693_v62  ;;  %v1459_v28 = vadd.f32 %v1331_v32, %v1203_v31  ;;  %v1460_v30 = vadd.f32 %v1332_v29, %v1204_v4  ;;  %v1461_v1 = vadd.f32 %v1333_v42, %v1205_v37  ;;  %v3697_v29 = vld [vmem:[#allocation86_spill] sm:$0xff]  ;;  %v3698_v42 = vld [vmem:[#allocation93_spill] sm:$0xff]  ;;  %v3700_v38 = vld [vmem:[#allocation95_spill] sm:$0xff]  ;;  %v941_v37 = vpop.permute.xlu0 %940 }
 0x176   :  { %v1462_v24 = vadd.f32 %v1334_v26, %v1206_v20  ;;  %v1471_v63 = vadd.f32 %v1343_v9, %v1215_v23  ;;  %v1472_v12 = vadd.f32 %v1344_v13, %v1216_v43  ;;  %v1473_v35 = vadd.f32 %v1345_v56, %v1217_v16  ;;  %v3699_v9 = vld [vmem:[#allocation94_spill] sm:$0xff]  ;;  %v3701_v21 = vld [vmem:[#allocation96_spill] sm:$0xff]  ;;  %v1348_v23 = vld [vmem:[#allocation2 + $0x2a8] sm:$0xff] }
 0x177   :  { %v1474_v39 = vadd.f32 %v1346_v3, %v1218_v33  ;;  %1587 = vst [vmem:[#allocation5 + $0x220] sm:$0xff] %v1459_v28  ;;  %1588 = vst [vmem:[#allocation5 + $0x228] sm:$0xff] %v1460_v30  ;;  %v1083_v34 = vmul.f32 %v3642_v55, %v921_v49  ;;  %v1084_v52 = vmul.f32 %v3643_v8, %v921_v49  ;;  %v1349_v62 = vld [vmem:[#allocation2 + $0x2b0] sm:$0xff]  ;;  %v1350_v33 = vld [vmem:[#allocation2 + $0x2b8] sm:$0xff] }
 0x178   :  { %1589 = vst [vmem:[#allocation5 + $0x230] sm:$0xff] %v1461_v1  ;;  %1590 = vst [vmem:[#allocation5 + $0x238] sm:$0xff] %v1462_v24  ;;  %v1085_v59 = vmul.f32 %v3644_v47, %v921_v49  ;;  %v1086_v14 = vmul.f32 %v3645_v0, %v921_v49  ;;  %v1095_v19 = vmul.f32 %v3642_v55, %v933_v18  ;;  %v3696_v49 = vld [vmem:[#allocation85_spill] sm:$0xff]  ;;  %v1359_v28 = vld [vmem:[#allocation2 + $0x300] sm:$0xff] }
 0x179   :  { %1599 = vst [vmem:[#allocation5 + $0x280] sm:$0xff] %v1471_v63  ;;  %1600 = vst [vmem:[#allocation5 + $0x288] sm:$0xff] %v1472_v12  ;;  %v1096_v41 = vmul.f32 %v3643_v8, %v933_v18  ;;  %v1097_v58 = vmul.f32 %v3644_v47, %v933_v18  ;;  %v1098_v36 = vmul.f32 %v3645_v0, %v933_v18  ;;  %v3702_v63 = vld [vmem:[#allocation14_spill] sm:$0xff] }
 0x17a   :  { %1601 = vst [vmem:[#allocation5 + $0x290] sm:$0xff] %v1473_v35  ;;  %1602 = vst [vmem:[#allocation5 + $0x298] sm:$0xff] %v1474_v39  ;;  %v1211_v44 = vadd.f32 %v1083_v34, %v3694_v48  ;;  %v1212_v6 = vadd.f32 %v1084_v52, %v3695_v46  ;;  %v1213_v32 = vadd.f32 %v1085_v59, %v3696_v49  ;;  %v3703_v35 = vld [vmem:[#allocation15_spill] sm:$0xff]  ;;  %v1360_v52 = vld [vmem:[#allocation2 + $0x308] sm:$0xff] }
 0x17b   :  { %v1214_v2 = vadd.f32 %v1086_v14, %v3697_v29  ;;  %v1223_v26 = vadd.f32 %v1095_v19, %v3698_v42  ;;  %v1224_v57 = vadd.f32 %v1096_v41, %v3699_v9  ;;  %v1225_v45 = vadd.f32 %v1097_v58, %v3700_v38  ;;  %v1361_v59 = vld [vmem:[#allocation2 + $0x310] sm:$0xff]  ;;  %v1362_v14 = vld [vmem:[#allocation2 + $0x318] sm:$0xff]  ;;  %v3708_v41 = vld [vmem:[#allocation45_spill] sm:$0xff]  ;;  %v945_v29 = vpop.permute.xlu1 %944 }
 0x17c   :  { %v1226_v53 = vadd.f32 %v1098_v36, %v3701_v21  ;;  %v1467_v31 = vadd.f32 %v1339_v60, %v1211_v44  ;;  %v1468_v61 = vadd.f32 %v1340_v27, %v1212_v6  ;;  %v1469_v4 = vadd.f32 %v1341_v5, %v1213_v32  ;;  %v3705_v27 = vld [vmem:[#allocation17_spill] sm:$0xff]  ;;  %v3706_v5 = vld [vmem:[#allocation43_spill] sm:$0xff]  ;;  %v3709_v36 = vld [vmem:[#allocation46_spill] sm:$0xff]  ;;  %v949_v32 = vpop.permute.xlu0 %948 }
 0x17d   :  { %v1470_v50 = vadd.f32 %v1342_v51, %v1214_v2  ;;  %v1479_v20 = vadd.f32 %v1351_v15, %v1223_v26  ;;  %v1480_v13 = vadd.f32 %v1352_v10, %v1224_v57  ;;  %v1481_v56 = vadd.f32 %v1353_v54, %v1225_v45  ;;  %v3707_v15 = vld [vmem:[#allocation44_spill] sm:$0xff]  ;;  %v1356_v26 = vld [vmem:[#allocation2 + $0x2e8] sm:$0xff]  ;;  %v1357_v21 = vld [vmem:[#allocation2 + $0x2f0] sm:$0xff] }
 0x17e   :  { %v1482_v3 = vadd.f32 %v1354_v25, %v1226_v53  ;;  %1595 = vst [vmem:[#allocation5 + $0x260] sm:$0xff] %v1467_v31  ;;  %1596 = vst [vmem:[#allocation5 + $0x268] sm:$0xff] %v1468_v61  ;;  %v1091_v7 = vmul.f32 %v3642_v55, %v929_v11  ;;  %v1092_v43 = vmul.f32 %v3643_v8, %v929_v11  ;;  %v1355_v42 = vld [vmem:[#allocation2 + $0x2e0] sm:$0xff]  ;;  %v1358_v53 = vld [vmem:[#allocation2 + $0x2f8] sm:$0xff] }
 0x17f   :  { %1597 = vst [vmem:[#allocation5 + $0x270] sm:$0xff] %v1469_v4  ;;  %1598 = vst [vmem:[#allocation5 + $0x278] sm:$0xff] %v1470_v50  ;;  %v1093_v40 = vmul.f32 %v3644_v47, %v929_v11  ;;  %v1094_v16 = vmul.f32 %v3645_v0, %v929_v11  ;;  %v1103_v30 = vmul.f32 %v3642_v55, %v941_v37  ;;  %v3704_v11 = vld [vmem:[#allocation16_spill] sm:$0xff] }
 0x180   :  { %1607 = vst [vmem:[#allocation5 + $0x2c0] sm:$0xff] %v1479_v20  ;;  %1608 = vst [vmem:[#allocation5 + $0x2c8] sm:$0xff] %v1480_v13  ;;  %v1104_v1 = vmul.f32 %v3643_v8, %v941_v37  ;;  %v1105_v24 = vmul.f32 %v3644_v47, %v941_v37  ;;  %v1106_v18 = vmul.f32 %v3645_v0, %v941_v37  ;;  %v1367_v31 = vld [vmem:[#allocation2 + $0x340] sm:$0xff]  ;;  %v3710_v20 = vld [vmem:[#allocation27_spill] sm:$0xff] }
 0x181   :  { %1609 = vst [vmem:[#allocation5 + $0x2d0] sm:$0xff] %v1481_v56  ;;  %1610 = vst [vmem:[#allocation5 + $0x2d8] sm:$0xff] %v1482_v3  ;;  %v1219_v12 = vadd.f32 %v1091_v7, %v3702_v63  ;;  %v1220_v39 = vadd.f32 %v1092_v43, %v3703_v35  ;;  %v1221_v60 = vadd.f32 %v1093_v40, %v3704_v11  ;;  %v3711_v56 = vld [vmem:[#allocation28_spill] sm:$0xff]  ;;  %v1368_v43 = vld [vmem:[#allocation2 + $0x348] sm:$0xff] }
 0x182   :  { %v1222_v34 = vadd.f32 %v1094_v16, %v3705_v27  ;;  %v1231_v51 = vadd.f32 %v1103_v30, %v3706_v5  ;;  %v1232_v19 = vadd.f32 %v1104_v1, %v3707_v15  ;;  %v1233_v58 = vadd.f32 %v1105_v24, %v3708_v41  ;;  %v1369_v40 = vld [vmem:[#allocation2 + $0x350] sm:$0xff]  ;;  %v1370_v16 = vld [vmem:[#allocation2 + $0x358] sm:$0xff]  ;;  %v3716_v1 = vld [vmem:[#allocation57_spill] sm:$0xff]  ;;  %v953_v27 = vpop.permute.xlu1 %952 }
 0x183   :  { %v1234_v48 = vadd.f32 %v1106_v18, %v3709_v36  ;;  %v1475_v44 = vadd.f32 %v1347_v22, %v1219_v12  ;;  %v1476_v46 = vadd.f32 %v1348_v23, %v1220_v39  ;;  %v1477_v6 = vadd.f32 %v1349_v62, %v1221_v60  ;;  %v3713_v23 = vld [vmem:[#allocation30_spill] sm:$0xff]  ;;  %v3714_v62 = vld [vmem:[#allocation55_spill] sm:$0xff]  ;;  %v957_v60 = vpop.permute.xlu0 %956  ;;  %v1363_v5 = vld [vmem:[#allocation2 + $0x320] sm:$0xff] }
 0x184   :  { %v1478_v49 = vadd.f32 %v1350_v33, %v1222_v34  ;;  %v1487_v2 = vadd.f32 %v1359_v28, %v1231_v51  ;;  %v1488_v10 = vadd.f32 %v1360_v52, %v1232_v19  ;;  %v1489_v54 = vadd.f32 %v1361_v59, %v1233_v58  ;;  %v3715_v28 = vld [vmem:[#allocation56_spill] sm:$0xff]  ;;  %v3717_v18 = vld [vmem:[#allocation58_spill] sm:$0xff]  ;;  %v1364_v51 = vld [vmem:[#allocation2 + $0x328] sm:$0xff] }
 0x185   :  { %v1490_v25 = vadd.f32 %v1362_v14, %v1234_v48  ;;  %1603 = vst [vmem:[#allocation5 + $0x2a0] sm:$0xff] %v1475_v44  ;;  %1604 = vst [vmem:[#allocation5 + $0x2a8] sm:$0xff] %v1476_v46  ;;  %v1099_v9 = vmul.f32 %v3642_v55, %v937_v17  ;;  %v1100_v57 = vmul.f32 %v3643_v8, %v937_v17  ;;  %v1365_v36 = vld [vmem:[#allocation2 + $0x330] sm:$0xff]  ;;  %v1366_v48 = vld [vmem:[#allocation2 + $0x338] sm:$0xff] }
 0x186   :  { %1605 = vst [vmem:[#allocation5 + $0x2b0] sm:$0xff] %v1477_v6  ;;  %1606 = vst [vmem:[#allocation5 + $0x2b8] sm:$0xff] %v1478_v49  ;;  %v1101_v38 = vmul.f32 %v3644_v47, %v937_v17  ;;  %v1102_v45 = vmul.f32 %v3645_v0, %v937_v17  ;;  %v1111_v61 = vmul.f32 %v3642_v55, %v949_v32  ;;  %v3712_v17 = vld [vmem:[#allocation29_spill] sm:$0xff]  ;;  %v1375_v44 = vld [vmem:[#allocation2 + $0x380] sm:$0xff] }
 0x187   :  { %1615 = vst [vmem:[#allocation5 + $0x300] sm:$0xff] %v1487_v2  ;;  %1616 = vst [vmem:[#allocation5 + $0x308] sm:$0xff] %v1488_v10  ;;  %v1112_v4 = vmul.f32 %v3643_v8, %v949_v32  ;;  %v1113_v50 = vmul.f32 %v3644_v47, %v949_v32  ;;  %v1114_v37 = vmul.f32 %v3645_v0, %v949_v32  ;;  %v3718_v2 = vld [vmem:[#allocation39_spill] sm:$0xff] }
 0x188   :  { %1617 = vst [vmem:[#allocation5 + $0x310] sm:$0xff] %v1489_v54  ;;  %1618 = vst [vmem:[#allocation5 + $0x318] sm:$0xff] %v1490_v25  ;;  %v1227_v13 = vadd.f32 %v1099_v9, %v3710_v20  ;;  %v1228_v3 = vadd.f32 %v1100_v57, %v3711_v56  ;;  %v1229_v22 = vadd.f32 %v1101_v38, %v3712_v17  ;;  %v3719_v54 = vld [vmem:[#allocation40_spill] sm:$0xff]  ;;  %v1376_v57 = vld [vmem:[#allocation2 + $0x388] sm:$0xff] }
 0x189   :  { %v1230_v7 = vadd.f32 %v1102_v45, %v3713_v23  ;;  %v1239_v33 = vadd.f32 %v1111_v61, %v3714_v62  ;;  %v1240_v30 = vadd.f32 %v1112_v4, %v3715_v28  ;;  %v1241_v24 = vadd.f32 %v1113_v50, %v3716_v1  ;;  %v1377_v38 = vld [vmem:[#allocation2 + $0x390] sm:$0xff]  ;;  %v1378_v45 = vld [vmem:[#allocation2 + $0x398] sm:$0xff]  ;;  %v3724_v4 = vld [vmem:[#allocation69_spill] sm:$0xff]  ;;  %v961_v23 = vpop.permute.xlu1 %960 }
 0x18a   :  { %v1242_v63 = vadd.f32 %v1114_v37, %v3717_v18  ;;  %v1483_v12 = vadd.f32 %v1355_v42, %v1227_v13  ;;  %v1484_v35 = vadd.f32 %v1356_v26, %v1228_v3  ;;  %v1485_v39 = vadd.f32 %v1357_v21, %v1229_v22  ;;  %v3721_v26 = vld [vmem:[#allocation42_spill] sm:$0xff]  ;;  %v3722_v21 = vld [vmem:[#allocation67_spill] sm:$0xff]  ;;  %v965_v22 = vpop.permute.xlu0 %964  ;;  %v1371_v62 = vld [vmem:[#allocation2 + $0x360] sm:$0xff] }
 0x18b   :  { %v1486_v11 = vadd.f32 %v1358_v53, %v1230_v7  ;;  %v1495_v34 = vadd.f32 %v1367_v31, %v1239_v33  ;;  %v1496_v52 = vadd.f32 %v1368_v43, %v1240_v30  ;;  %v1497_v59 = vadd.f32 %v1369_v40, %v1241_v24  ;;  %v3723_v31 = vld [vmem:[#allocation68_spill] sm:$0xff]  ;;  %v3725_v37 = vld [vmem:[#allocation70_spill] sm:$0xff]  ;;  %v1372_v33 = vld [vmem:[#allocation2 + $0x368] sm:$0xff] }
 0x18c   :  { %v1498_v14 = vadd.f32 %v1370_v16, %v1242_v63  ;;  %1611 = vst [vmem:[#allocation5 + $0x2e0] sm:$0xff] %v1483_v12  ;;  %1612 = vst [vmem:[#allocation5 + $0x2e8] sm:$0xff] %v1484_v35  ;;  %v1107_v15 = vmul.f32 %v3642_v55, %v945_v29  ;;  %v1108_v19 = vmul.f32 %v3643_v8, %v945_v29  ;;  %v1373_v18 = vld [vmem:[#allocation2 + $0x370] sm:$0xff]  ;;  %v1374_v63 = vld [vmem:[#allocation2 + $0x378] sm:$0xff] }
 0x18d   :  { %1613 = vst [vmem:[#allocation5 + $0x2f0] sm:$0xff] %v1485_v39  ;;  %1614 = vst [vmem:[#allocation5 + $0x2f8] sm:$0xff] %v1486_v11  ;;  %v1109_v41 = vmul.f32 %v3644_v47, %v945_v29  ;;  %v1110_v58 = vmul.f32 %v3645_v0, %v945_v29  ;;  %v1119_v46 = vmul.f32 %v3642_v55, %v957_v60  ;;  %v3720_v29 = vld [vmem:[#allocation41_spill] sm:$0xff]  ;;  %v1383_v12 = vld [vmem:[#allocation2 + $0x3c0] sm:$0xff] }
 0x18e   :  { %1623 = vst [vmem:[#allocation5 + $0x340] sm:$0xff] %v1495_v34  ;;  %1624 = vst [vmem:[#allocation5 + $0x348] sm:$0xff] %v1496_v52  ;;  %v1120_v6 = vmul.f32 %v3643_v8, %v957_v60  ;;  %v1121_v49 = vmul.f32 %v3644_v47, %v957_v60  ;;  %v1122_v32 = vmul.f32 %v3645_v0, %v957_v60  ;;  %v3726_v34 = vld [vmem:[#allocation51_spill] sm:$0xff] }
 0x18f   :  { %1625 = vst [vmem:[#allocation5 + $0x350] sm:$0xff] %v1497_v59  ;;  %1626 = vst [vmem:[#allocation5 + $0x358] sm:$0xff] %v1498_v14  ;;  %v1235_v10 = vadd.f32 %v1107_v15, %v3718_v2  ;;  %v1236_v25 = vadd.f32 %v1108_v19, %v3719_v54  ;;  %v1237_v42 = vadd.f32 %v1109_v41, %v3720_v29  ;;  %v3727_v59 = vld [vmem:[#allocation52_spill] sm:$0xff]  ;;  %v1384_v19 = vld [vmem:[#allocation2 + $0x3c8] sm:$0xff] }
 0x190   :  { %v1238_v9 = vadd.f32 %v1110_v58, %v3721_v26  ;;  %v1247_v53 = vadd.f32 %v1119_v46, %v3722_v21  ;;  %v1248_v61 = vadd.f32 %v1120_v6, %v3723_v31  ;;  %v1249_v50 = vadd.f32 %v1121_v49, %v3724_v4  ;;  %v1385_v41 = vld [vmem:[#allocation2 + $0x3d0] sm:$0xff]  ;;  %v1386_v58 = vld [vmem:[#allocation2 + $0x3d8] sm:$0xff]  ;;  %v3732_v6 = vld [vmem:[#allocation81_spill] sm:$0xff] }
 0x191   :  { %v1250_v20 = vadd.f32 %v1122_v32, %v3725_v37  ;;  %v1491_v13 = vadd.f32 %v1363_v5, %v1235_v10  ;;  %v1492_v56 = vadd.f32 %v1364_v51, %v1236_v25  ;;  %v1493_v3 = vadd.f32 %v1365_v36, %v1237_v42  ;;  %v3729_v51 = vld [vmem:[#allocation54_spill] sm:$0xff]  ;;  %v3730_v36 = vld [vmem:[#allocation79_spill] sm:$0xff]  ;;  %v969_v42 = vpop.permute.xlu1 %968  ;;  %v1380_v21 = vld [vmem:[#allocation2 + $0x3a8] sm:$0xff] }
 0x192   :  { %v1494_v17 = vadd.f32 %v1366_v48, %v1238_v9  ;;  %v1503_v7 = vadd.f32 %v1375_v44, %v1247_v53  ;;  %v1504_v43 = vadd.f32 %v1376_v57, %v1248_v61  ;;  %v1505_v40 = vadd.f32 %v1377_v38, %v1249_v50  ;;  %v3731_v44 = vld [vmem:[#allocation80_spill] sm:$0xff]  ;;  %v3733_v32 = vld [vmem:[#allocation82_spill] sm:$0xff]  ;;  %v1382_v37 = vld [vmem:[#allocation2 + $0x3b8] sm:$0xff] }
 0x193   :  { %v1506_v16 = vadd.f32 %v1378_v45, %v1250_v20  ;;  %1619 = vst [vmem:[#allocation5 + $0x320] sm:$0xff] %v1491_v13  ;;  %1620 = vst [vmem:[#allocation5 + $0x328] sm:$0xff] %v1492_v56  ;;  %v1115_v28 = vmul.f32 %v3642_v55, %v953_v27  ;;  %v1116_v30 = vmul.f32 %v3643_v8, %v953_v27  ;;  %v1379_v45 = vld [vmem:[#allocation2 + $0x3a0] sm:$0xff]  ;;  %v1381_v50 = vld [vmem:[#allocation2 + $0x3b0] sm:$0xff] }
 0x194   :  { %1621 = vst [vmem:[#allocation5 + $0x330] sm:$0xff] %v1493_v3  ;;  %1622 = vst [vmem:[#allocation5 + $0x338] sm:$0xff] %v1494_v17  ;;  %v1117_v1 = vmul.f32 %v3644_v47, %v953_v27  ;;  %v1118_v24 = vmul.f32 %v3645_v0, %v953_v27  ;;  %v1127_v35 = vmul.f32 %v3642_v55, %v965_v22  ;;  %v3728_v27 = vld [vmem:[#allocation53_spill] sm:$0xff]  ;;  %v1387_v20 = vld [vmem:[#allocation2 + $0x3e0] sm:$0xff] }
 0x195   :  { %1631 = vst [vmem:[#allocation5 + $0x380] sm:$0xff] %v1503_v7  ;;  %1632 = vst [vmem:[#allocation5 + $0x388] sm:$0xff] %v1504_v43  ;;  %v1128_v39 = vmul.f32 %v3643_v8, %v965_v22  ;;  %v1129_v11 = vmul.f32 %v3644_v47, %v965_v22  ;;  %v1130_v60 = vmul.f32 %v3645_v0, %v965_v22  ;;  %v3734_v22 = vld [vmem:[#allocation63_spill] sm:$0xff]  ;;  %v3735_v43 = vld [vmem:[#allocation64_spill] sm:$0xff] }
 0x196   :  { %1633 = vst [vmem:[#allocation5 + $0x390] sm:$0xff] %v1505_v40  ;;  %1634 = vst [vmem:[#allocation5 + $0x398] sm:$0xff] %v1506_v16  ;;  %v1243_v52 = vadd.f32 %v1115_v28, %v3726_v34  ;;  %v1244_v14 = vadd.f32 %v1116_v30, %v3727_v59  ;;  %v1245_v5 = vadd.f32 %v1117_v1, %v3728_v27  ;;  %v1388_v28 = vld [vmem:[#allocation2 + $0x3e8] sm:$0xff]  ;;  %v1389_v30 = vld [vmem:[#allocation2 + $0x3f0] sm:$0xff] }
 0x197   :  { %v1246_v15 = vadd.f32 %v1118_v24, %v3729_v51  ;;  %v1255_v48 = vadd.f32 %v1127_v35, %v3730_v36  ;;  %v1256_v46 = vadd.f32 %v1128_v39, %v3731_v44  ;;  %v1257_v49 = vadd.f32 %v1129_v11, %v3732_v6  ;;  %v1390_v1 = vld [vmem:[#allocation2 + $0x3f8] sm:$0xff] }
 0x198   :  { %v1258_v2 = vadd.f32 %v1130_v60, %v3733_v32  ;;  %v1499_v10 = vadd.f32 %v1371_v62, %v1243_v52  ;;  %v1500_v54 = vadd.f32 %v1372_v33, %v1244_v14  ;;  %v1501_v25 = vadd.f32 %v1373_v18, %v1245_v5  ;;  %v3737_v62 = vld [vmem:[#allocation66_spill] sm:$0xff] }
 0x199   :  { %v1502_v29 = vadd.f32 %v1374_v63, %v1246_v15  ;;  %v1511_v26 = vadd.f32 %v1383_v12, %v1255_v48  ;;  %v1512_v9 = vadd.f32 %v1384_v19, %v1256_v46  ;;  %v1513_v57 = vadd.f32 %v1385_v41, %v1257_v49 }
 0x19a   :  { %v1514_v38 = vadd.f32 %v1386_v58, %v1258_v2  ;;  %1627 = vst [vmem:[#allocation5 + $0x360] sm:$0xff] %v1499_v10  ;;  %1628 = vst [vmem:[#allocation5 + $0x368] sm:$0xff] %v1500_v54  ;;  %v1123_v53 = vmul.f32 %v3642_v55, %v961_v23  ;;  %v1124_v31 = vmul.f32 %v3643_v8, %v961_v23 }
 0x19b   :  { %1629 = vst [vmem:[#allocation5 + $0x370] sm:$0xff] %v1501_v25  ;;  %1630 = vst [vmem:[#allocation5 + $0x378] sm:$0xff] %v1502_v29  ;;  %v1125_v61 = vmul.f32 %v3644_v47, %v961_v23  ;;  %v1126_v4 = vmul.f32 %v3645_v0, %v961_v23  ;;  %v1131_v13 = vmul.f32 %v3642_v55, %v969_v42  ;;  %v3736_v23 = vld [vmem:[#allocation65_spill] sm:$0xff]  ;;  %v3738_v55 = vld [vmem:[#allocation75_spill] sm:$0xff] }
 0x19c   :  { %1639 = vst [vmem:[#allocation5 + $0x3c0] sm:$0xff] %v1511_v26  ;;  %1640 = vst [vmem:[#allocation5 + $0x3c8] sm:$0xff] %v1512_v9  ;;  %v1132_v56 = vmul.f32 %v3643_v8, %v969_v42  ;;  %v1133_v3 = vmul.f32 %v3644_v47, %v969_v42  ;;  %v1134_v17 = vmul.f32 %v3645_v0, %v969_v42  ;;  %v3739_v8 = vld [vmem:[#allocation76_spill] sm:$0xff]  ;;  %v3740_v47 = vld [vmem:[#allocation77_spill] sm:$0xff] }
 0x19d   :  { %1641 = vst [vmem:[#allocation5 + $0x3d0] sm:$0xff] %v1513_v57  ;;  %1642 = vst [vmem:[#allocation5 + $0x3d8] sm:$0xff] %v1514_v38  ;;  %v1251_v7 = vadd.f32 %v1123_v53, %v3734_v22  ;;  %v1252_v40 = vadd.f32 %v1124_v31, %v3735_v43  ;;  %v1253_v16 = vadd.f32 %v1125_v61, %v3736_v23  ;;  %v3741_v0 = vld [vmem:[#allocation78_spill] sm:$0xff] }
 0x19e   :  { %v1254_v33 = vadd.f32 %v1126_v4, %v3737_v62  ;;  %v1259_v24 = vadd.f32 %v1131_v13, %v3738_v55  ;;  %v1260_v18 = vadd.f32 %v1132_v56, %v3739_v8  ;;  %v1261_v63 = vadd.f32 %v1133_v3, %v3740_v47 }
 0x19f   :  { %v1262_v12 = vadd.f32 %v1134_v17, %v3741_v0  ;;  %v1507_v35 = vadd.f32 %v1379_v45, %v1251_v7  ;;  %v1508_v39 = vadd.f32 %v1380_v21, %v1252_v40  ;;  %v1509_v11 = vadd.f32 %v1381_v50, %v1253_v16 }
 0x1a0   :  { %v1510_v60 = vadd.f32 %v1382_v37, %v1254_v33  ;;  %v1515_v34 = vadd.f32 %v1387_v20, %v1259_v24  ;;  %v1516_v52 = vadd.f32 %v1388_v28, %v1260_v18  ;;  %v1517_v59 = vadd.f32 %v1389_v30, %v1261_v63 }
 0x1a1   :  { %v1518_v14 = vadd.f32 %v1390_v1, %v1262_v12  ;;  %1635 = vst [vmem:[#allocation5 + $0x3a0] sm:$0xff] %v1507_v35  ;;  %1636 = vst [vmem:[#allocation5 + $0x3a8] sm:$0xff] %v1508_v39 }
 0x1a2   :  { %1637 = vst [vmem:[#allocation5 + $0x3b0] sm:$0xff] %v1509_v11  ;;  %1638 = vst [vmem:[#allocation5 + $0x3b8] sm:$0xff] %v1510_v60 }
 0x1a3   :  { %1643 = vst [vmem:[#allocation5 + $0x3e0] sm:$0xff] %v1515_v34  ;;  %1644 = vst [vmem:[#allocation5 + $0x3e8] sm:$0xff] %v1516_v52 }
 0x1a4   :  { %1645 = vst [vmem:[#allocation5 + $0x3f0] sm:$0xff] %v1517_v59  ;;  %1646 = vst [vmem:[#allocation5 + $0x3f8] sm:$0xff] %v1518_v14 }
 0x1a5   :  { %1710 = shalt.err (!%p1707_p12)
}
 0x1a6   :  { %s1711_s17 = scalar_lea.hbm %s3367_s3, 16384 }
 0x1a7   :  { %p1712_p13 = scmp.ne.s32.totalorder %s3367_s3, %s1711_s17  ;;  %p1715_p0 = scmp.lt.u32.totalorder %s1711_s17, %s3367_s3 }
 0x1a9   :  { %p1717_p1 = pnand %p1715_p0, %p1712_p13 }
 0x1ab   :  { %1720 = shalt.err (!%p1717_p1)
}
 0x1ac   :  { %1658 = dma.vmem_to_hbm [thread:$0]  %s1653_s13, 16384, %s3367_s3, [#allocation4], %s1726_s22, %s1726_s22, %s1727_s23  }
 0x1ad   :  { %1723 = dma.done.wait [#allocation4], 16384  }
 0x1ae   :  { %1724 = vsyncadd [#allocation4], 4294950912 }
 0x1af   :  { %1662 = vsyncpa [#allocation3], 1 }
 0x1b0   :  { %1663 = vsyncpa [#allocation4], 1 }

</bundles_post_ra>
